<compile_context>
chip_gen: v7x
topology: tpu7x:2x2x1
jax: 0.10.0
libtpu: 0.0.40
codegen_flags: <defaults>
</compile_context>

<pallas_src>
import functools
import math

import jax
import jax.numpy as jnp
from jax.experimental import pallas as pl
from jax.experimental.pallas import tpu as pltpu

EPS = 1e-6
NEG_INF = -1e30

# ----------------------------- config ---------------------------------------
BATCH = 2
IN_CHANS = 3
IMG = 16
PATCH = 8
EMBED_DIM = 32                     # == `inp` of the classifier head
NUM_HEADS = 4
HEAD_DIM = EMBED_DIM // NUM_HEADS
DEPTH = 2
MLP_DIM = 4 * EMBED_DIM
HEAD_HIDDEN = 256
NUM_CLASS = 10
NUM_PATCHES = (IMG // PATCH) ** 2
NUM_TOKENS = NUM_PATCHES + 1       # patches + [CLS]
N_ROWS = BATCH * NUM_TOKENS        # flattened (B*T)
LOGITS_PAD = 128                   # lane-dense padded logits width
QKV_WIDTH = 2 * EMBED_DIM + NUM_HEADS * EMBED_DIM   # [Q | K | V@Wo] fused lanes
VO_OFF = 2 * EMBED_DIM


# ----------------------------- kernel ----------------------------------------
def _layernorm(v, g, b):
    mu = jnp.mean(v, axis=-1, keepdims=True)
    var = jnp.mean(jnp.square(v - mu), axis=-1, keepdims=True)
    return (v - mu) * jax.lax.rsqrt(var + EPS) * g + b


def _fused_forward_kernel(patches_ref, patch_w_ref, cls_pos_ref, mask_ref,
                          ln1_g_ref, ln1_b_ref, wqkv_ref, bqkv_ref, bo_ref,
                          ln2_g_ref, ln2_b_ref, w1_ref, b1_ref, w2_ref, b2_ref,
                          sel_ref, norm_g_ref, norm_b_ref,
                          hw1_ref, hb1_ref, hw2_ref, hb2_ref,
                          out_ref, *, depth, num_heads):
    f32 = jnp.float32
    bf16 = jnp.bfloat16

    # Patch embedding + token assembly.  [CLS] rows of `patches` are zero, so the
    # matmul gives 0 there; cls_pos supplies cls_token + pos_embed for those rows
    # and pos_embed + patch_b (folded) for the patch rows.
    x = jnp.dot(patches_ref[...].astype(bf16), patch_w_ref[...],
                preferred_element_type=f32) + cls_pos_ref[...]           # (N, D) f32

    mask = mask_ref[...]                                                 # (N, N)

    for d in range(depth):               # static unroll (DEPTH is tiny)
        # ---- multi-head self-attention (pre-norm) ------------------------------
        # Single fused projection: lanes = [Q_allheads | K_allheads | (V@Wo)_perhead].
        # 1/sqrt(dh) folded into the Q part; bv@Wo folded into the bias.
        xn = _layernorm(x, ln1_g_ref[d], ln1_b_ref[d])                   # (N, D)
        proj = jnp.dot(xn.astype(bf16), wqkv_ref[d],
                       preferred_element_type=f32) + bqkv_ref[d]         # (N, 2D+H*D)
        q_all = proj[:, :EMBED_DIM].astype(bf16)                         # (N, D)
        k_all = proj[:, EMBED_DIM:VO_OFF].astype(bf16)                   # (N, D)
        vo_all = proj[:, VO_OFF:].astype(bf16)                           # (N, H*D)

        attn = jnp.zeros_like(x)                                         # (N, D) f32
        for h in range(num_heads):
            q = q_all[:, h * HEAD_DIM:(h + 1) * HEAD_DIM]                # (N, dh)
            k = k_all[:, h * HEAD_DIM:(h + 1) * HEAD_DIM]                # (N, dh)
            vo = vo_all[:, h * EMBED_DIM:(h + 1) * EMBED_DIM]            # (N, D)
            s = jnp.einsum('nd,md->nm', q, k,
                           preferred_element_type=f32) + mask            # (N, N)
            s = s - jnp.max(s, axis=-1, keepdims=True)
            pw = jnp.exp(s)
            pw = pw * pl.reciprocal(jnp.sum(pw, axis=-1, keepdims=True),
                                    approx=True)
            attn = attn + jnp.dot(pw.astype(bf16), vo,
                                  preferred_element_type=f32)            # (N, D)
        x = x + attn + bo_ref[d]

        # ---- MLP (pre-norm) -----------------------------------------------------
        yn = _layernorm(x, ln2_g_ref[d], ln2_b_ref[d])
        hdn = jnp.dot(yn.astype(bf16), w1_ref[d],
                      preferred_element_type=f32) + b1_ref[d]
        # TODO(synk): PyTorch nn.GELU default is exact erf; tanh approximation used
        # here since erf has no guaranteed Mosaic lowering (tiny numeric deviation).
        hdn = jax.nn.gelu(hdn, approximate=True)
        x = x + jnp.dot(hdn.astype(bf16), w2_ref[d],
                        preferred_element_type=f32) + b2_ref[d]

    # Pool [CLS] rows, transformer.norm, classifier: Linear -> ReLU -> Linear.
    feats = jnp.dot(sel_ref[...], x, preferred_element_type=f32)         # (B, D)
    fn = _layernorm(feats, norm_g_ref[...], norm_b_ref[...])
    hh = jnp.dot(fn.astype(bf16), hw1_ref[...],
                 preferred_element_type=f32) + hb1_ref[...]
    hh = jnp.maximum(hh, 0.0)                                            # ReLU
    out_ref[...] = jnp.dot(hh.astype(bf16), hw2_ref[...],
                           preferred_element_type=f32) + hb2_ref[...]    # (B, 128)


# --------------------------- pallas wrapper -----------------------------------
def fused_forward(patches_padded, kp):
    args = (patches_padded, kp['patch_w'], kp['cls_pos'], kp['attn_mask'],
            kp['ln1_g'], kp['ln1_b'], kp['wqkv'], kp['bqkv'], kp['bo'],
            kp['ln2_g'], kp['ln2_b'], kp['w1'], kp['b1'], kp['w2'], kp['b2'],
            kp['sel_cls'], kp['norm_g'], kp['norm_b'],
            kp['head_w1'], kp['head_b1'], kp['head_w2p'], kp['head_b2p'])
    # Single invocation, whole-array VMEM operands (everything is tiny), no grid.
    return pl.pallas_call(
        functools.partial(_fused_forward_kernel, depth=DEPTH, num_heads=NUM_HEADS),
        out_shape=jax.ShapeDtypeStruct((BATCH, LOGITS_PAD), jnp.float32),
        compiler_params=pltpu.CompilerParams(vmem_limit_bytes=32 * 1024 * 1024),
    )(*args)


@jax.jit
def dino_classifier_forward(x, kparams):
    """x: (B, C, H, W) float32 NCHW  ->  logits (B, NUM_CLASS)."""
    bsz, c, hh, ww = x.shape
    gh, gw = hh // PATCH, ww // PATCH
    patches = x.reshape(bsz, c, gh, PATCH, gw, PATCH)
    patches = patches.transpose(0, 2, 4, 1, 3, 5)            # (B, gh, gw, C, p, p)
    patches = patches.reshape(bsz, gh * gw, c * PATCH * PATCH)
    # Insert a zero row per image at the [CLS] position so patch-embed output rows
    # are already in (B*T, D) token order (replaces the in-kernel scatter matmul).
    patches_padded = jnp.concatenate(
        [jnp.zeros((bsz, 1, c * PATCH * PATCH), patches.dtype), patches],
        axis=1).reshape(bsz * (gh * gw + 1), c * PATCH * PATCH)
    logits_padded = fused_forward(patches_padded, kparams)    # (B, 128) lane-dense
    return logits_padded[:, :NUM_CLASS]


# ------------------------------ params ----------------------------------------
def init_params(key):
    ks = iter(jax.random.split(key, 64))

    def w(shape, scale=0.02):
        return scale * jax.random.normal(next(ks), shape, dtype=jnp.float32)

    params = {
        # Conv weight in im2col form (C*p*p, D); real PyTorch (D,C,p,p) weights
        # would need a (1,2,3,0)-permute before reshape to match this ordering.
        'patch_w': w((IN_CHANS * PATCH * PATCH, EMBED_DIM)),
        'patch_b': w((1, EMBED_DIM)),
        'cls_token': w((1, EMBED_DIM)),
        'pos_embed': w((NUM_TOKENS, EMBED_DIM)),
        # transformer.norm
        'norm_g': jnp.ones((1, EMBED_DIM), jnp.float32),
        'norm_b': jnp.zeros((1, EMBED_DIM), jnp.float32),
        # classifier head
        'head_w1': w((EMBED_DIM, HEAD_HIDDEN)),
        'head_b1': w((1, HEAD_HIDDEN)),
        'head_w2': w((HEAD_HIDDEN, NUM_CLASS)),
        'head_b2': w((1, NUM_CLASS)),
        'blocks': [],
    }
    for _ in range(DEPTH):
        params['blocks'].append({
            'ln1_g': jnp.ones((1, EMBED_DIM), jnp.float32),
            'ln1_b': jnp.zeros((1, EMBED_DIM), jnp.float32),
            'wq': w((EMBED_DIM, EMBED_DIM)), 'bq': w((1, EMBED_DIM)),
            'wk': w((EMBED_DIM, EMBED_DIM)), 'bk': w((1, EMBED_DIM)),
            'wv': w((EMBED_DIM, EMBED_DIM)), 'bv': w((1, EMBED_DIM)),
            'wo': w((EMBED_DIM, EMBED_DIM)), 'bo': w((1, EMBED_DIM)),
            'ln2_g': jnp.ones((1, EMBED_DIM), jnp.float32),
            'ln2_b': jnp.zeros((1, EMBED_DIM), jnp.float32),
            'w1': w((EMBED_DIM, MLP_DIM)), 'b1': w((1, MLP_DIM)),
            'w2': w((MLP_DIM, EMBED_DIM)), 'b2': w((1, EMBED_DIM)),
        })
    return params


def prepare_params(p):
    """Repack module params into the fused/stacked layouts the kernel uses."""
    f32, bf16 = jnp.float32, jnp.bfloat16
    scale = 1.0 / math.sqrt(HEAD_DIM)
    blocks = p['blocks']

    def stack(name, dtype=f32):
        return jnp.stack([blk[name] for blk in blocks], axis=0).astype(dtype)

    # Fused per-block projection: lanes = [ Wq*scale (D) | Wk (D) | per-head Wv@Wo (H*D) ].
    wqkv_l, bqkv_l = [], []
    for blk in blocks:
        wo_h = blk['wo'].reshape(NUM_HEADS, HEAD_DIM, EMBED_DIM)          # (H, dh, D)
        wv_h = blk['wv'].reshape(EMBED_DIM, NUM_HEADS, HEAD_DIM
                                 ).transpose(1, 0, 2)                     # (H, D, dh)
        wvo = jnp.einsum('hde,hef->hdf', wv_h, wo_h)                      # (H, D, D)
        wvo = wvo.transpose(1, 0, 2).reshape(EMBED_DIM,
                                             NUM_HEADS * EMBED_DIM)       # (D, H*D)
        wqkv_l.append(jnp.concatenate([blk['wq'] * scale, blk['wk'], wvo], axis=1))

        bv_h = blk['bv'].reshape(NUM_HEADS, 1, HEAD_DIM)                  # (H, 1, dh)
        bvo = jnp.einsum('hxe,hef->hxf', bv_h, wo_h)                      # (H, 1, D)
        bvo = bvo.transpose(1, 0, 2).reshape(1, NUM_HEADS * EMBED_DIM)    # (1, H*D)
        bqkv_l.append(jnp.concatenate([blk['bq'] * scale, blk['bk'], bvo], axis=1))

    # Token-assembly / pooling constants (computed once, outside the kernel).
    n = jnp.arange(N_ROWS)
    t = n % NUM_TOKENS
    b = n // NUM_TOKENS
    # cls rows get cls_token + pos_embed; patch rows get pos_embed + patch_b (folded).
    cls_pos = p['pos_embed'][t] + jnp.where((t == 0)[:, None],
                                            p['cls_token'], p['patch_b'])
    attn_mask = jnp.where(b[:, None] == b[None, :], 0.0, NEG_INF).astype(f32)
    sel_cls = ((jnp.arange(BATCH) * NUM_TOKENS)[:, None] == n[None, :]
               ).astype(f32)                                              # (B, N)

    # Lane-dense padded classifier output weights (slice back to NUM_CLASS outside).
    head_w2p = jnp.zeros((HEAD_HIDDEN, LOGITS_PAD), f32
                         ).at[:, :NUM_CLASS].set(p['head_w2'])
    head_b2p = jnp.zeros((1, LOGITS_PAD), f32).at[:, :NUM_CLASS].set(p['head_b2'])

    return {
        'patch_w': p['patch_w'].astype(bf16),
        'cls_pos': cls_pos.astype(f32), 'attn_mask': attn_mask,
        'ln1_g': stack('ln1_g'), 'ln1_b': stack('ln1_b'),
        'wqkv': jnp.stack(wqkv_l, axis=0).astype(bf16),   # (DEPTH, D, 2D+H*D)
        'bqkv': jnp.stack(bqkv_l, axis=0).astype(f32),    # (DEPTH, 1, 2D+H*D)
        'bo': stack('bo'),
        'ln2_g': stack('ln2_g'), 'ln2_b': stack('ln2_b'),
        'w1': stack('w1', bf16), 'b1': stack('b1'),
        'w2': stack('w2', bf16), 'b2': stack('b2'),
        'sel_cls': sel_cls, 'norm_g': p['norm_g'], 'norm_b': p['norm_b'],
        'head_w1': p['head_w1'].astype(bf16), 'head_b1': p['head_b1'],
        'head_w2p': head_w2p.astype(bf16), 'head_b2p': head_b2p,
    }


if __name__ == "__main__":
    key = jax.random.PRNGKey(0)
    pkey, xkey = jax.random.split(key)
    params = init_params(pkey)
    kparams = prepare_params(params)
    x = jax.random.normal(xkey, (BATCH, IN_CHANS, IMG, IMG), dtype=jnp.float32)

    out = dino_classifier_forward(x, kparams)
    out = jax.block_until_ready(out)

    assert out.shape == (BATCH, NUM_CLASS), out.shape
    assert bool(jnp.all(jnp.isfinite(out)))
    print("KERNEL_OK")
</pallas_src>

<mosaic_0001>
module attributes {stable_mosaic.version = 11 : i64} {
  func.func @_fused_forward_kernel(%arg0: memref<10x192xf32, #tpu.memory_space<vmem>>, %arg1: memref<192x32xbf16, #tpu.memory_space<vmem>>, %arg2: memref<10x32xf32, #tpu.memory_space<vmem>>, %arg3: memref<10x10xf32, #tpu.memory_space<vmem>>, %arg4: memref<2x1x32xf32, #tpu.memory_space<vmem>>, %arg5: memref<2x1x32xf32, #tpu.memory_space<vmem>>, %arg6: memref<2x32x192xbf16, #tpu.memory_space<vmem>>, %arg7: memref<2x1x192xf32, #tpu.memory_space<vmem>>, %arg8: memref<2x1x32xf32, #tpu.memory_space<vmem>>, %arg9: memref<2x1x32xf32, #tpu.memory_space<vmem>>, %arg10: memref<2x1x32xf32, #tpu.memory_space<vmem>>, %arg11: memref<2x32x128xbf16, #tpu.memory_space<vmem>>, %arg12: memref<2x1x128xf32, #tpu.memory_space<vmem>>, %arg13: memref<2x128x32xbf16, #tpu.memory_space<vmem>>, %arg14: memref<2x1x32xf32, #tpu.memory_space<vmem>>, %arg15: memref<2x10xf32, #tpu.memory_space<vmem>>, %arg16: memref<1x32xf32, #tpu.memory_space<vmem>>, %arg17: memref<1x32xf32, #tpu.memory_space<vmem>>, %arg18: memref<32x256xbf16, #tpu.memory_space<vmem>>, %arg19: memref<1x256xf32, #tpu.memory_space<vmem>>, %arg20: memref<256x128xbf16, #tpu.memory_space<vmem>>, %arg21: memref<1x128xf32, #tpu.memory_space<vmem>>, %arg22: memref<2x128xf32, #tpu.memory_space<vmem>>) attributes {dimension_semantics = [], scalar_prefetch = 0 : i64, scratch_operands = 0 : i64, tpu.core_type = #tpu.core_type<tc>} {
    %c0 = arith.constant 0 : index
    %c0_0 = arith.constant 0 : index
    %0 = vector.load %arg0[%c0, %c0_0] : memref<10x192xf32, #tpu.memory_space<vmem>>, vector<10x192xf32>
    %1 = arith.truncf %0 : vector<10x192xf32> to vector<10x192xbf16>
    %c0_1 = arith.constant 0 : index
    %c0_2 = arith.constant 0 : index
    %2 = vector.load %arg1[%c0_1, %c0_2] : memref<192x32xbf16, #tpu.memory_space<vmem>>, vector<192x32xbf16>
    %cst = arith.constant dense<0.000000e+00> : vector<10x32xf32>
    %3 = tpu.matmul %1, %2, %cst {dimension_numbers = #tpu.dot_dimension_numbers<[1], [0], [0], [1], [0, 0, 1, 1], [], []>} : vector<10x192xbf16>, vector<192x32xbf16>, vector<10x32xf32> -> vector<10x32xf32>
    %c0_3 = arith.constant 0 : index
    %c0_4 = arith.constant 0 : index
    %4 = vector.load %arg2[%c0_3, %c0_4] : memref<10x32xf32, #tpu.memory_space<vmem>>, vector<10x32xf32>
    %5 = arith.addf %3, %4 : vector<10x32xf32>
    %c0_5 = arith.constant 0 : index
    %c0_6 = arith.constant 0 : index
    %6 = vector.load %arg3[%c0_5, %c0_6] : memref<10x10xf32, #tpu.memory_space<vmem>>, vector<10x10xf32>
    %c0_7 = arith.constant 0 : index
    %c0_8 = arith.constant 0 : index
    %c0_9 = arith.constant 0 : index
    %7 = vector.load %arg4[%c0_7, %c0_8, %c0_9] : memref<2x1x32xf32, #tpu.memory_space<vmem>>, vector<1x1x32xf32>
    %8 = vector.shape_cast %7 : vector<1x1x32xf32> to vector<1x32xf32>
    %c0_10 = arith.constant 0 : index
    %c0_11 = arith.constant 0 : index
    %c0_12 = arith.constant 0 : index
    %9 = vector.load %arg5[%c0_10, %c0_11, %c0_12] : memref<2x1x32xf32, #tpu.memory_space<vmem>>, vector<1x1x32xf32>
    %10 = vector.shape_cast %9 : vector<1x1x32xf32> to vector<1x32xf32>
    %cst_13 = arith.constant dense<0.000000e+00> : vector<10xf32>
    %11 = vector.multi_reduction <add>, %5, %cst_13 [1] : vector<10x32xf32> to vector<10xf32>
    %12 = vector.shape_cast %11 : vector<10xf32> to vector<10x1xf32>
    %cst_14 = arith.constant 3.200000e+01 : f32
    %13 = vector.broadcast %cst_14 : f32 to vector<10x1xf32>
    %14 = arith.divf %12, %13 : vector<10x1xf32>
    %15 = vector.broadcast %14 : vector<10x1xf32> to vector<10x32xf32>
    %16 = arith.subf %5, %15 : vector<10x32xf32>
    %17 = arith.mulf %16, %16 : vector<10x32xf32>
    %cst_15 = arith.constant dense<0.000000e+00> : vector<10xf32>
    %18 = vector.multi_reduction <add>, %17, %cst_15 [1] : vector<10x32xf32> to vector<10xf32>
    %19 = vector.shape_cast %18 : vector<10xf32> to vector<10x1xf32>
    %cst_16 = arith.constant 3.200000e+01 : f32
    %20 = vector.broadcast %cst_16 : f32 to vector<10x1xf32>
    %21 = arith.divf %19, %20 : vector<10x1xf32>
    %22 = vector.broadcast %14 : vector<10x1xf32> to vector<10x32xf32>
    %23 = arith.subf %5, %22 : vector<10x32xf32>
    %cst_17 = arith.constant 9.99999997E-7 : f32
    %24 = vector.broadcast %cst_17 : f32 to vector<10x1xf32>
    %25 = arith.addf %21, %24 : vector<10x1xf32>
    %26 = math.rsqrt %25 : vector<10x1xf32>
    %27 = vector.broadcast %26 : vector<10x1xf32> to vector<10x32xf32>
    %28 = arith.mulf %23, %27 : vector<10x32xf32>
    %29 = vector.broadcast %8 : vector<1x32xf32> to vector<10x32xf32>
    %30 = arith.mulf %28, %29 : vector<10x32xf32>
    %31 = vector.broadcast %10 : vector<1x32xf32> to vector<10x32xf32>
    %32 = arith.addf %30, %31 : vector<10x32xf32>
    %33 = arith.truncf %32 : vector<10x32xf32> to vector<10x32xbf16>
    %c0_18 = arith.constant 0 : index
    %c0_19 = arith.constant 0 : index
    %c0_20 = arith.constant 0 : index
    %34 = vector.load %arg6[%c0_18, %c0_19, %c0_20] : memref<2x32x192xbf16, #tpu.memory_space<vmem>>, vector<1x32x192xbf16>
    %35 = vector.shape_cast %34 : vector<1x32x192xbf16> to vector<32x192xbf16>
    %cst_21 = arith.constant dense<0.000000e+00> : vector<10x192xf32>
    %36 = tpu.matmul %33, %35, %cst_21 {dimension_numbers = #tpu.dot_dimension_numbers<[1], [0], [0], [1], [0, 0, 1, 1], [], []>} : vector<10x32xbf16>, vector<32x192xbf16>, vector<10x192xf32> -> vector<10x192xf32>
    %c0_22 = arith.constant 0 : index
    %c0_23 = arith.constant 0 : index
    %c0_24 = arith.constant 0 : index
    %37 = vector.load %arg7[%c0_22, %c0_23, %c0_24] : memref<2x1x192xf32, #tpu.memory_space<vmem>>, vector<1x1x192xf32>
    %38 = vector.shape_cast %37 : vector<1x1x192xf32> to vector<1x192xf32>
    %39 = vector.broadcast %38 : vector<1x192xf32> to vector<10x192xf32>
    %40 = arith.addf %36, %39 : vector<10x192xf32>
    %41 = vector.extract_strided_slice %40 {offsets = [0, 0], sizes = [10, 32], strides = [1, 1]} : vector<10x192xf32> to vector<10x32xf32>
    %42 = arith.truncf %41 : vector<10x32xf32> to vector<10x32xbf16>
    %43 = vector.extract_strided_slice %40 {offsets = [0, 32], sizes = [10, 32], strides = [1, 1]} : vector<10x192xf32> to vector<10x32xf32>
    %44 = arith.truncf %43 : vector<10x32xf32> to vector<10x32xbf16>
    %45 = vector.extract_strided_slice %40 {offsets = [0, 64], sizes = [10, 128], strides = [1, 1]} : vector<10x192xf32> to vector<10x128xf32>
    %46 = arith.truncf %45 : vector<10x128xf32> to vector<10x128xbf16>
    %cst_25 = arith.constant 0.000000e+00 : f32
    %47 = vector.broadcast %cst_25 : f32 to vector<10x32xf32>
    %48 = vector.extract_strided_slice %42 {offsets = [0, 0], sizes = [10, 8], strides = [1, 1]} : vector<10x32xbf16> to vector<10x8xbf16>
    %49 = vector.extract_strided_slice %44 {offsets = [0, 0], sizes = [10, 8], strides = [1, 1]} : vector<10x32xbf16> to vector<10x8xbf16>
    %50 = vector.extract_strided_slice %46 {offsets = [0, 0], sizes = [10, 32], strides = [1, 1]} : vector<10x128xbf16> to vector<10x32xbf16>
    "tpu.trace_start"() <{level = 10 : i32, message = "nd,md->nm"}> : () -> ()
    %cst_26 = arith.constant dense<0.000000e+00> : vector<10x10xf32>
    %51 = tpu.matmul %48, %49, %cst_26 {dimension_numbers = #tpu.dot_dimension_numbers<[1], [1], [0], [0], [0, 0, 1, 0], [], []>} : vector<10x8xbf16>, vector<10x8xbf16>, vector<10x10xf32> -> vector<10x10xf32>
    "tpu.trace_stop"() : () -> ()
    %52 = arith.addf %51, %6 : vector<10x10xf32>
    %cst_27 = arith.constant dense<0xFF800000> : vector<10xf32>
    %53 = vector.multi_reduction <maximumf>, %52, %cst_27 [1] : vector<10x10xf32> to vector<10xf32>
    %54 = vector.shape_cast %53 : vector<10xf32> to vector<10x1xf32>
    %55 = vector.broadcast %54 : vector<10x1xf32> to vector<10x10xf32>
    %56 = arith.subf %52, %55 : vector<10x10xf32>
    %57 = math.exp %56 : vector<10x10xf32>
    %cst_28 = arith.constant dense<0.000000e+00> : vector<10xf32>
    %58 = vector.multi_reduction <add>, %57, %cst_28 [1] : vector<10x10xf32> to vector<10xf32>
    %59 = vector.shape_cast %58 : vector<10xf32> to vector<10x1xf32>
    %60 = tpu.reciprocal %59 {approx = true} : vector<10x1xf32> -> vector<10x1xf32>
    %61 = vector.broadcast %60 : vector<10x1xf32> to vector<10x10xf32>
    %62 = arith.mulf %57, %61 : vector<10x10xf32>
    %63 = arith.truncf %62 : vector<10x10xf32> to vector<10x10xbf16>
    %cst_29 = arith.constant dense<0.000000e+00> : vector<10x32xf32>
    %64 = tpu.matmul %63, %50, %cst_29 {dimension_numbers = #tpu.dot_dimension_numbers<[1], [0], [0], [1], [0, 0, 1, 1], [], []>} : vector<10x10xbf16>, vector<10x32xbf16>, vector<10x32xf32> -> vector<10x32xf32>
    %65 = arith.addf %47, %64 : vector<10x32xf32>
    %66 = vector.extract_strided_slice %42 {offsets = [0, 8], sizes = [10, 8], strides = [1, 1]} : vector<10x32xbf16> to vector<10x8xbf16>
    %67 = vector.extract_strided_slice %44 {offsets = [0, 8], sizes = [10, 8], strides = [1, 1]} : vector<10x32xbf16> to vector<10x8xbf16>
    %68 = vector.extract_strided_slice %46 {offsets = [0, 32], sizes = [10, 32], strides = [1, 1]} : vector<10x128xbf16> to vector<10x32xbf16>
    "tpu.trace_start"() <{level = 10 : i32, message = "nd,md->nm"}> : () -> ()
    %cst_30 = arith.constant dense<0.000000e+00> : vector<10x10xf32>
    %69 = tpu.matmul %66, %67, %cst_30 {dimension_numbers = #tpu.dot_dimension_numbers<[1], [1], [0], [0], [0, 0, 1, 0], [], []>} : vector<10x8xbf16>, vector<10x8xbf16>, vector<10x10xf32> -> vector<10x10xf32>
    "tpu.trace_stop"() : () -> ()
    %70 = arith.addf %69, %6 : vector<10x10xf32>
    %cst_31 = arith.constant dense<0xFF800000> : vector<10xf32>
    %71 = vector.multi_reduction <maximumf>, %70, %cst_31 [1] : vector<10x10xf32> to vector<10xf32>
    %72 = vector.shape_cast %71 : vector<10xf32> to vector<10x1xf32>
    %73 = vector.broadcast %72 : vector<10x1xf32> to vector<10x10xf32>
    %74 = arith.subf %70, %73 : vector<10x10xf32>
    %75 = math.exp %74 : vector<10x10xf32>
    %cst_32 = arith.constant dense<0.000000e+00> : vector<10xf32>
    %76 = vector.multi_reduction <add>, %75, %cst_32 [1] : vector<10x10xf32> to vector<10xf32>
    %77 = vector.shape_cast %76 : vector<10xf32> to vector<10x1xf32>
    %78 = tpu.reciprocal %77 {approx = true} : vector<10x1xf32> -> vector<10x1xf32>
    %79 = vector.broadcast %78 : vector<10x1xf32> to vector<10x10xf32>
    %80 = arith.mulf %75, %79 : vector<10x10xf32>
    %81 = arith.truncf %80 : vector<10x10xf32> to vector<10x10xbf16>
    %cst_33 = arith.constant dense<0.000000e+00> : vector<10x32xf32>
    %82 = tpu.matmul %81, %68, %cst_33 {dimension_numbers = #tpu.dot_dimension_numbers<[1], [0], [0], [1], [0, 0, 1, 1], [], []>} : vector<10x10xbf16>, vector<10x32xbf16>, vector<10x32xf32> -> vector<10x32xf32>
    %83 = arith.addf %65, %82 : vector<10x32xf32>
    %84 = vector.extract_strided_slice %42 {offsets = [0, 16], sizes = [10, 8], strides = [1, 1]} : vector<10x32xbf16> to vector<10x8xbf16>
    %85 = vector.extract_strided_slice %44 {offsets = [0, 16], sizes = [10, 8], strides = [1, 1]} : vector<10x32xbf16> to vector<10x8xbf16>
    %86 = vector.extract_strided_slice %46 {offsets = [0, 64], sizes = [10, 32], strides = [1, 1]} : vector<10x128xbf16> to vector<10x32xbf16>
    "tpu.trace_start"() <{level = 10 : i32, message = "nd,md->nm"}> : () -> ()
    %cst_34 = arith.constant dense<0.000000e+00> : vector<10x10xf32>
    %87 = tpu.matmul %84, %85, %cst_34 {dimension_numbers = #tpu.dot_dimension_numbers<[1], [1], [0], [0], [0, 0, 1, 0], [], []>} : vector<10x8xbf16>, vector<10x8xbf16>, vector<10x10xf32> -> vector<10x10xf32>
    "tpu.trace_stop"() : () -> ()
    %88 = arith.addf %87, %6 : vector<10x10xf32>
    %cst_35 = arith.constant dense<0xFF800000> : vector<10xf32>
    %89 = vector.multi_reduction <maximumf>, %88, %cst_35 [1] : vector<10x10xf32> to vector<10xf32>
    %90 = vector.shape_cast %89 : vector<10xf32> to vector<10x1xf32>
    %91 = vector.broadcast %90 : vector<10x1xf32> to vector<10x10xf32>
    %92 = arith.subf %88, %91 : vector<10x10xf32>
    %93 = math.exp %92 : vector<10x10xf32>
    %cst_36 = arith.constant dense<0.000000e+00> : vector<10xf32>
    %94 = vector.multi_reduction <add>, %93, %cst_36 [1] : vector<10x10xf32> to vector<10xf32>
    %95 = vector.shape_cast %94 : vector<10xf32> to vector<10x1xf32>
    %96 = tpu.reciprocal %95 {approx = true} : vector<10x1xf32> -> vector<10x1xf32>
    %97 = vector.broadcast %96 : vector<10x1xf32> to vector<10x10xf32>
    %98 = arith.mulf %93, %97 : vector<10x10xf32>
    %99 = arith.truncf %98 : vector<10x10xf32> to vector<10x10xbf16>
    %cst_37 = arith.constant dense<0.000000e+00> : vector<10x32xf32>
    %100 = tpu.matmul %99, %86, %cst_37 {dimension_numbers = #tpu.dot_dimension_numbers<[1], [0], [0], [1], [0, 0, 1, 1], [], []>} : vector<10x10xbf16>, vector<10x32xbf16>, vector<10x32xf32> -> vector<10x32xf32>
    %101 = arith.addf %83, %100 : vector<10x32xf32>
    %102 = vector.extract_strided_slice %42 {offsets = [0, 24], sizes = [10, 8], strides = [1, 1]} : vector<10x32xbf16> to vector<10x8xbf16>
    %103 = vector.extract_strided_slice %44 {offsets = [0, 24], sizes = [10, 8], strides = [1, 1]} : vector<10x32xbf16> to vector<10x8xbf16>
    %104 = vector.extract_strided_slice %46 {offsets = [0, 96], sizes = [10, 32], strides = [1, 1]} : vector<10x128xbf16> to vector<10x32xbf16>
    "tpu.trace_start"() <{level = 10 : i32, message = "nd,md->nm"}> : () -> ()
    %cst_38 = arith.constant dense<0.000000e+00> : vector<10x10xf32>
    %105 = tpu.matmul %102, %103, %cst_38 {dimension_numbers = #tpu.dot_dimension_numbers<[1], [1], [0], [0], [0, 0, 1, 0], [], []>} : vector<10x8xbf16>, vector<10x8xbf16>, vector<10x10xf32> -> vector<10x10xf32>
    "tpu.trace_stop"() : () -> ()
    %106 = arith.addf %105, %6 : vector<10x10xf32>
    %cst_39 = arith.constant dense<0xFF800000> : vector<10xf32>
    %107 = vector.multi_reduction <maximumf>, %106, %cst_39 [1] : vector<10x10xf32> to vector<10xf32>
    %108 = vector.shape_cast %107 : vector<10xf32> to vector<10x1xf32>
    %109 = vector.broadcast %108 : vector<10x1xf32> to vector<10x10xf32>
    %110 = arith.subf %106, %109 : vector<10x10xf32>
    %111 = math.exp %110 : vector<10x10xf32>
    %cst_40 = arith.constant dense<0.000000e+00> : vector<10xf32>
    %112 = vector.multi_reduction <add>, %111, %cst_40 [1] : vector<10x10xf32> to vector<10xf32>
    %113 = vector.shape_cast %112 : vector<10xf32> to vector<10x1xf32>
    %114 = tpu.reciprocal %113 {approx = true} : vector<10x1xf32> -> vector<10x1xf32>
    %115 = vector.broadcast %114 : vector<10x1xf32> to vector<10x10xf32>
    %116 = arith.mulf %111, %115 : vector<10x10xf32>
    %117 = arith.truncf %116 : vector<10x10xf32> to vector<10x10xbf16>
    %cst_41 = arith.constant dense<0.000000e+00> : vector<10x32xf32>
    %118 = tpu.matmul %117, %104, %cst_41 {dimension_numbers = #tpu.dot_dimension_numbers<[1], [0], [0], [1], [0, 0, 1, 1], [], []>} : vector<10x10xbf16>, vector<10x32xbf16>, vector<10x32xf32> -> vector<10x32xf32>
    %119 = arith.addf %101, %118 : vector<10x32xf32>
    %120 = arith.addf %5, %119 : vector<10x32xf32>
    %c0_42 = arith.constant 0 : index
    %c0_43 = arith.constant 0 : index
    %c0_44 = arith.constant 0 : index
    %121 = vector.load %arg8[%c0_42, %c0_43, %c0_44] : memref<2x1x32xf32, #tpu.memory_space<vmem>>, vector<1x1x32xf32>
    %122 = vector.shape_cast %121 : vector<1x1x32xf32> to vector<1x32xf32>
    %123 = vector.broadcast %122 : vector<1x32xf32> to vector<10x32xf32>
    %124 = arith.addf %120, %123 : vector<10x32xf32>
    %c0_45 = arith.constant 0 : index
    %c0_46 = arith.constant 0 : index
    %c0_47 = arith.constant 0 : index
    %125 = vector.load %arg9[%c0_45, %c0_46, %c0_47] : memref<2x1x32xf32, #tpu.memory_space<vmem>>, vector<1x1x32xf32>
    %126 = vector.shape_cast %125 : vector<1x1x32xf32> to vector<1x32xf32>
    %c0_48 = arith.constant 0 : index
    %c0_49 = arith.constant 0 : index
    %c0_50 = arith.constant 0 : index
    %127 = vector.load %arg10[%c0_48, %c0_49, %c0_50] : memref<2x1x32xf32, #tpu.memory_space<vmem>>, vector<1x1x32xf32>
    %128 = vector.shape_cast %127 : vector<1x1x32xf32> to vector<1x32xf32>
    %cst_51 = arith.constant dense<0.000000e+00> : vector<10xf32>
    %129 = vector.multi_reduction <add>, %124, %cst_51 [1] : vector<10x32xf32> to vector<10xf32>
    %130 = vector.shape_cast %129 : vector<10xf32> to vector<10x1xf32>
    %cst_52 = arith.constant 3.200000e+01 : f32
    %131 = vector.broadcast %cst_52 : f32 to vector<10x1xf32>
    %132 = arith.divf %130, %131 : vector<10x1xf32>
    %133 = vector.broadcast %132 : vector<10x1xf32> to vector<10x32xf32>
    %134 = arith.subf %124, %133 : vector<10x32xf32>
    %135 = arith.mulf %134, %134 : vector<10x32xf32>
    %cst_53 = arith.constant dense<0.000000e+00> : vector<10xf32>
    %136 = vector.multi_reduction <add>, %135, %cst_53 [1] : vector<10x32xf32> to vector<10xf32>
    %137 = vector.shape_cast %136 : vector<10xf32> to vector<10x1xf32>
    %cst_54 = arith.constant 3.200000e+01 : f32
    %138 = vector.broadcast %cst_54 : f32 to vector<10x1xf32>
    %139 = arith.divf %137, %138 : vector<10x1xf32>
    %140 = vector.broadcast %132 : vector<10x1xf32> to vector<10x32xf32>
    %141 = arith.subf %124, %140 : vector<10x32xf32>
    %cst_55 = arith.constant 9.99999997E-7 : f32
    %142 = vector.broadcast %cst_55 : f32 to vector<10x1xf32>
    %143 = arith.addf %139, %142 : vector<10x1xf32>
    %144 = math.rsqrt %143 : vector<10x1xf32>
    %145 = vector.broadcast %144 : vector<10x1xf32> to vector<10x32xf32>
    %146 = arith.mulf %141, %145 : vector<10x32xf32>
    %147 = vector.broadcast %126 : vector<1x32xf32> to vector<10x32xf32>
    %148 = arith.mulf %146, %147 : vector<10x32xf32>
    %149 = vector.broadcast %128 : vector<1x32xf32> to vector<10x32xf32>
    %150 = arith.addf %148, %149 : vector<10x32xf32>
    %151 = arith.truncf %150 : vector<10x32xf32> to vector<10x32xbf16>
    %c0_56 = arith.constant 0 : index
    %c0_57 = arith.constant 0 : index
    %c0_58 = arith.constant 0 : index
    %152 = vector.load %arg11[%c0_56, %c0_57, %c0_58] : memref<2x32x128xbf16, #tpu.memory_space<vmem>>, vector<1x32x128xbf16>
    %153 = vector.shape_cast %152 : vector<1x32x128xbf16> to vector<32x128xbf16>
    %cst_59 = arith.constant dense<0.000000e+00> : vector<10x128xf32>
    %154 = tpu.matmul %151, %153, %cst_59 {dimension_numbers = #tpu.dot_dimension_numbers<[1], [0], [0], [1], [0, 0, 1, 1], [], []>} : vector<10x32xbf16>, vector<32x128xbf16>, vector<10x128xf32> -> vector<10x128xf32>
    %c0_60 = arith.constant 0 : index
    %c0_61 = arith.constant 0 : index
    %c0_62 = arith.constant 0 : index
    %155 = vector.load %arg12[%c0_60, %c0_61, %c0_62] : memref<2x1x128xf32, #tpu.memory_space<vmem>>, vector<1x1x128xf32>
    %156 = vector.shape_cast %155 : vector<1x1x128xf32> to vector<1x128xf32>
    %157 = vector.broadcast %156 : vector<1x128xf32> to vector<10x128xf32>
    %158 = arith.addf %154, %157 : vector<10x128xf32>
    %159 = arith.mulf %158, %158 : vector<10x128xf32>
    %160 = arith.mulf %158, %159 : vector<10x128xf32>
    %cst_63 = arith.constant 4.471500e-02 : f32
    %161 = vector.broadcast %cst_63 : f32 to vector<10x128xf32>
    %162 = arith.mulf %161, %160 : vector<10x128xf32>
    %163 = arith.addf %158, %162 : vector<10x128xf32>
    %cst_64 = arith.constant 0.797884583 : f32
    %164 = vector.broadcast %cst_64 : f32 to vector<10x128xf32>
    %165 = arith.mulf %164, %163 : vector<10x128xf32>
    %166 = math.tanh %165 : vector<10x128xf32>
    %cst_65 = arith.constant 1.000000e+00 : f32
    %167 = vector.broadcast %cst_65 : f32 to vector<10x128xf32>
    %168 = arith.addf %167, %166 : vector<10x128xf32>
    %cst_66 = arith.constant 5.000000e-01 : f32
    %169 = vector.broadcast %cst_66 : f32 to vector<10x128xf32>
    %170 = arith.mulf %169, %168 : vector<10x128xf32>
    %171 = arith.mulf %158, %170 : vector<10x128xf32>
    %172 = arith.truncf %171 : vector<10x128xf32> to vector<10x128xbf16>
    %c0_67 = arith.constant 0 : index
    %c0_68 = arith.constant 0 : index
    %c0_69 = arith.constant 0 : index
    %173 = vector.load %arg13[%c0_67, %c0_68, %c0_69] : memref<2x128x32xbf16, #tpu.memory_space<vmem>>, vector<1x128x32xbf16>
    %174 = vector.shape_cast %173 : vector<1x128x32xbf16> to vector<128x32xbf16>
    %cst_70 = arith.constant dense<0.000000e+00> : vector<10x32xf32>
    %175 = tpu.matmul %172, %174, %cst_70 {dimension_numbers = #tpu.dot_dimension_numbers<[1], [0], [0], [1], [0, 0, 1, 1], [], []>} : vector<10x128xbf16>, vector<128x32xbf16>, vector<10x32xf32> -> vector<10x32xf32>
    %176 = arith.addf %124, %175 : vector<10x32xf32>
    %c0_71 = arith.constant 0 : index
    %c0_72 = arith.constant 0 : index
    %c0_73 = arith.constant 0 : index
    %177 = vector.load %arg14[%c0_71, %c0_72, %c0_73] : memref<2x1x32xf32, #tpu.memory_space<vmem>>, vector<1x1x32xf32>
    %178 = vector.shape_cast %177 : vector<1x1x32xf32> to vector<1x32xf32>
    %179 = vector.broadcast %178 : vector<1x32xf32> to vector<10x32xf32>
    %180 = arith.addf %176, %179 : vector<10x32xf32>
    %c1 = arith.constant 1 : index
    %c0_74 = arith.constant 0 : index
    %c0_75 = arith.constant 0 : index
    %181 = vector.load %arg4[%c1, %c0_74, %c0_75] : memref<2x1x32xf32, #tpu.memory_space<vmem>>, vector<1x1x32xf32>
    %182 = vector.shape_cast %181 : vector<1x1x32xf32> to vector<1x32xf32>
    %c1_76 = arith.constant 1 : index
    %c0_77 = arith.constant 0 : index
    %c0_78 = arith.constant 0 : index
    %183 = vector.load %arg5[%c1_76, %c0_77, %c0_78] : memref<2x1x32xf32, #tpu.memory_space<vmem>>, vector<1x1x32xf32>
    %184 = vector.shape_cast %183 : vector<1x1x32xf32> to vector<1x32xf32>
    %cst_79 = arith.constant dense<0.000000e+00> : vector<10xf32>
    %185 = vector.multi_reduction <add>, %180, %cst_79 [1] : vector<10x32xf32> to vector<10xf32>
    %186 = vector.shape_cast %185 : vector<10xf32> to vector<10x1xf32>
    %cst_80 = arith.constant 3.200000e+01 : f32
    %187 = vector.broadcast %cst_80 : f32 to vector<10x1xf32>
    %188 = arith.divf %186, %187 : vector<10x1xf32>
    %189 = vector.broadcast %188 : vector<10x1xf32> to vector<10x32xf32>
    %190 = arith.subf %180, %189 : vector<10x32xf32>
    %191 = arith.mulf %190, %190 : vector<10x32xf32>
    %cst_81 = arith.constant dense<0.000000e+00> : vector<10xf32>
    %192 = vector.multi_reduction <add>, %191, %cst_81 [1] : vector<10x32xf32> to vector<10xf32>
    %193 = vector.shape_cast %192 : vector<10xf32> to vector<10x1xf32>
    %cst_82 = arith.constant 3.200000e+01 : f32
    %194 = vector.broadcast %cst_82 : f32 to vector<10x1xf32>
    %195 = arith.divf %193, %194 : vector<10x1xf32>
    %196 = vector.broadcast %188 : vector<10x1xf32> to vector<10x32xf32>
    %197 = arith.subf %180, %196 : vector<10x32xf32>
    %cst_83 = arith.constant 9.99999997E-7 : f32
    %198 = vector.broadcast %cst_83 : f32 to vector<10x1xf32>
    %199 = arith.addf %195, %198 : vector<10x1xf32>
    %200 = math.rsqrt %199 : vector<10x1xf32>
    %201 = vector.broadcast %200 : vector<10x1xf32> to vector<10x32xf32>
    %202 = arith.mulf %197, %201 : vector<10x32xf32>
    %203 = vector.broadcast %182 : vector<1x32xf32> to vector<10x32xf32>
    %204 = arith.mulf %202, %203 : vector<10x32xf32>
    %205 = vector.broadcast %184 : vector<1x32xf32> to vector<10x32xf32>
    %206 = arith.addf %204, %205 : vector<10x32xf32>
    %207 = arith.truncf %206 : vector<10x32xf32> to vector<10x32xbf16>
    %c1_84 = arith.constant 1 : index
    %c0_85 = arith.constant 0 : index
    %c0_86 = arith.constant 0 : index
    %208 = vector.load %arg6[%c1_84, %c0_85, %c0_86] : memref<2x32x192xbf16, #tpu.memory_space<vmem>>, vector<1x32x192xbf16>
    %209 = vector.shape_cast %208 : vector<1x32x192xbf16> to vector<32x192xbf16>
    %cst_87 = arith.constant dense<0.000000e+00> : vector<10x192xf32>
    %210 = tpu.matmul %207, %209, %cst_87 {dimension_numbers = #tpu.dot_dimension_numbers<[1], [0], [0], [1], [0, 0, 1, 1], [], []>} : vector<10x32xbf16>, vector<32x192xbf16>, vector<10x192xf32> -> vector<10x192xf32>
    %c1_88 = arith.constant 1 : index
    %c0_89 = arith.constant 0 : index
    %c0_90 = arith.constant 0 : index
    %211 = vector.load %arg7[%c1_88, %c0_89, %c0_90] : memref<2x1x192xf32, #tpu.memory_space<vmem>>, vector<1x1x192xf32>
    %212 = vector.shape_cast %211 : vector<1x1x192xf32> to vector<1x192xf32>
    %213 = vector.broadcast %212 : vector<1x192xf32> to vector<10x192xf32>
    %214 = arith.addf %210, %213 : vector<10x192xf32>
    %215 = vector.extract_strided_slice %214 {offsets = [0, 0], sizes = [10, 32], strides = [1, 1]} : vector<10x192xf32> to vector<10x32xf32>
    %216 = arith.truncf %215 : vector<10x32xf32> to vector<10x32xbf16>
    %217 = vector.extract_strided_slice %214 {offsets = [0, 32], sizes = [10, 32], strides = [1, 1]} : vector<10x192xf32> to vector<10x32xf32>
    %218 = arith.truncf %217 : vector<10x32xf32> to vector<10x32xbf16>
    %219 = vector.extract_strided_slice %214 {offsets = [0, 64], sizes = [10, 128], strides = [1, 1]} : vector<10x192xf32> to vector<10x128xf32>
    %220 = arith.truncf %219 : vector<10x128xf32> to vector<10x128xbf16>
    %cst_91 = arith.constant 0.000000e+00 : f32
    %221 = vector.broadcast %cst_91 : f32 to vector<10x32xf32>
    %222 = vector.extract_strided_slice %216 {offsets = [0, 0], sizes = [10, 8], strides = [1, 1]} : vector<10x32xbf16> to vector<10x8xbf16>
    %223 = vector.extract_strided_slice %218 {offsets = [0, 0], sizes = [10, 8], strides = [1, 1]} : vector<10x32xbf16> to vector<10x8xbf16>
    %224 = vector.extract_strided_slice %220 {offsets = [0, 0], sizes = [10, 32], strides = [1, 1]} : vector<10x128xbf16> to vector<10x32xbf16>
    "tpu.trace_start"() <{level = 10 : i32, message = "nd,md->nm"}> : () -> ()
    %cst_92 = arith.constant dense<0.000000e+00> : vector<10x10xf32>
    %225 = tpu.matmul %222, %223, %cst_92 {dimension_numbers = #tpu.dot_dimension_numbers<[1], [1], [0], [0], [0, 0, 1, 0], [], []>} : vector<10x8xbf16>, vector<10x8xbf16>, vector<10x10xf32> -> vector<10x10xf32>
    "tpu.trace_stop"() : () -> ()
    %226 = arith.addf %225, %6 : vector<10x10xf32>
    %cst_93 = arith.constant dense<0xFF800000> : vector<10xf32>
    %227 = vector.multi_reduction <maximumf>, %226, %cst_93 [1] : vector<10x10xf32> to vector<10xf32>
    %228 = vector.shape_cast %227 : vector<10xf32> to vector<10x1xf32>
    %229 = vector.broadcast %228 : vector<10x1xf32> to vector<10x10xf32>
    %230 = arith.subf %226, %229 : vector<10x10xf32>
    %231 = math.exp %230 : vector<10x10xf32>
    %cst_94 = arith.constant dense<0.000000e+00> : vector<10xf32>
    %232 = vector.multi_reduction <add>, %231, %cst_94 [1] : vector<10x10xf32> to vector<10xf32>
    %233 = vector.shape_cast %232 : vector<10xf32> to vector<10x1xf32>
    %234 = tpu.reciprocal %233 {approx = true} : vector<10x1xf32> -> vector<10x1xf32>
    %235 = vector.broadcast %234 : vector<10x1xf32> to vector<10x10xf32>
    %236 = arith.mulf %231, %235 : vector<10x10xf32>
    %237 = arith.truncf %236 : vector<10x10xf32> to vector<10x10xbf16>
    %cst_95 = arith.constant dense<0.000000e+00> : vector<10x32xf32>
    %238 = tpu.matmul %237, %224, %cst_95 {dimension_numbers = #tpu.dot_dimension_numbers<[1], [0], [0], [1], [0, 0, 1, 1], [], []>} : vector<10x10xbf16>, vector<10x32xbf16>, vector<10x32xf32> -> vector<10x32xf32>
    %239 = arith.addf %221, %238 : vector<10x32xf32>
    %240 = vector.extract_strided_slice %216 {offsets = [0, 8], sizes = [10, 8], strides = [1, 1]} : vector<10x32xbf16> to vector<10x8xbf16>
    %241 = vector.extract_strided_slice %218 {offsets = [0, 8], sizes = [10, 8], strides = [1, 1]} : vector<10x32xbf16> to vector<10x8xbf16>
    %242 = vector.extract_strided_slice %220 {offsets = [0, 32], sizes = [10, 32], strides = [1, 1]} : vector<10x128xbf16> to vector<10x32xbf16>
    "tpu.trace_start"() <{level = 10 : i32, message = "nd,md->nm"}> : () -> ()
    %cst_96 = arith.constant dense<0.000000e+00> : vector<10x10xf32>
    %243 = tpu.matmul %240, %241, %cst_96 {dimension_numbers = #tpu.dot_dimension_numbers<[1], [1], [0], [0], [0, 0, 1, 0], [], []>} : vector<10x8xbf16>, vector<10x8xbf16>, vector<10x10xf32> -> vector<10x10xf32>
    "tpu.trace_stop"() : () -> ()
    %244 = arith.addf %243, %6 : vector<10x10xf32>
    %cst_97 = arith.constant dense<0xFF800000> : vector<10xf32>
    %245 = vector.multi_reduction <maximumf>, %244, %cst_97 [1] : vector<10x10xf32> to vector<10xf32>
    %246 = vector.shape_cast %245 : vector<10xf32> to vector<10x1xf32>
    %247 = vector.broadcast %246 : vector<10x1xf32> to vector<10x10xf32>
    %248 = arith.subf %244, %247 : vector<10x10xf32>
    %249 = math.exp %248 : vector<10x10xf32>
    %cst_98 = arith.constant dense<0.000000e+00> : vector<10xf32>
    %250 = vector.multi_reduction <add>, %249, %cst_98 [1] : vector<10x10xf32> to vector<10xf32>
    %251 = vector.shape_cast %250 : vector<10xf32> to vector<10x1xf32>
    %252 = tpu.reciprocal %251 {approx = true} : vector<10x1xf32> -> vector<10x1xf32>
    %253 = vector.broadcast %252 : vector<10x1xf32> to vector<10x10xf32>
    %254 = arith.mulf %249, %253 : vector<10x10xf32>
    %255 = arith.truncf %254 : vector<10x10xf32> to vector<10x10xbf16>
    %cst_99 = arith.constant dense<0.000000e+00> : vector<10x32xf32>
    %256 = tpu.matmul %255, %242, %cst_99 {dimension_numbers = #tpu.dot_dimension_numbers<[1], [0], [0], [1], [0, 0, 1, 1], [], []>} : vector<10x10xbf16>, vector<10x32xbf16>, vector<10x32xf32> -> vector<10x32xf32>
    %257 = arith.addf %239, %256 : vector<10x32xf32>
    %258 = vector.extract_strided_slice %216 {offsets = [0, 16], sizes = [10, 8], strides = [1, 1]} : vector<10x32xbf16> to vector<10x8xbf16>
    %259 = vector.extract_strided_slice %218 {offsets = [0, 16], sizes = [10, 8], strides = [1, 1]} : vector<10x32xbf16> to vector<10x8xbf16>
    %260 = vector.extract_strided_slice %220 {offsets = [0, 64], sizes = [10, 32], strides = [1, 1]} : vector<10x128xbf16> to vector<10x32xbf16>
    "tpu.trace_start"() <{level = 10 : i32, message = "nd,md->nm"}> : () -> ()
    %cst_100 = arith.constant dense<0.000000e+00> : vector<10x10xf32>
    %261 = tpu.matmul %258, %259, %cst_100 {dimension_numbers = #tpu.dot_dimension_numbers<[1], [1], [0], [0], [0, 0, 1, 0], [], []>} : vector<10x8xbf16>, vector<10x8xbf16>, vector<10x10xf32> -> vector<10x10xf32>
    "tpu.trace_stop"() : () -> ()
    %262 = arith.addf %261, %6 : vector<10x10xf32>
    %cst_101 = arith.constant dense<0xFF800000> : vector<10xf32>
    %263 = vector.multi_reduction <maximumf>, %262, %cst_101 [1] : vector<10x10xf32> to vector<10xf32>
    %264 = vector.shape_cast %263 : vector<10xf32> to vector<10x1xf32>
    %265 = vector.broadcast %264 : vector<10x1xf32> to vector<10x10xf32>
    %266 = arith.subf %262, %265 : vector<10x10xf32>
    %267 = math.exp %266 : vector<10x10xf32>
    %cst_102 = arith.constant dense<0.000000e+00> : vector<10xf32>
    %268 = vector.multi_reduction <add>, %267, %cst_102 [1] : vector<10x10xf32> to vector<10xf32>
    %269 = vector.shape_cast %268 : vector<10xf32> to vector<10x1xf32>
    %270 = tpu.reciprocal %269 {approx = true} : vector<10x1xf32> -> vector<10x1xf32>
    %271 = vector.broadcast %270 : vector<10x1xf32> to vector<10x10xf32>
    %272 = arith.mulf %267, %271 : vector<10x10xf32>
    %273 = arith.truncf %272 : vector<10x10xf32> to vector<10x10xbf16>
    %cst_103 = arith.constant dense<0.000000e+00> : vector<10x32xf32>
    %274 = tpu.matmul %273, %260, %cst_103 {dimension_numbers = #tpu.dot_dimension_numbers<[1], [0], [0], [1], [0, 0, 1, 1], [], []>} : vector<10x10xbf16>, vector<10x32xbf16>, vector<10x32xf32> -> vector<10x32xf32>
    %275 = arith.addf %257, %274 : vector<10x32xf32>
    %276 = vector.extract_strided_slice %216 {offsets = [0, 24], sizes = [10, 8], strides = [1, 1]} : vector<10x32xbf16> to vector<10x8xbf16>
    %277 = vector.extract_strided_slice %218 {offsets = [0, 24], sizes = [10, 8], strides = [1, 1]} : vector<10x32xbf16> to vector<10x8xbf16>
    %278 = vector.extract_strided_slice %220 {offsets = [0, 96], sizes = [10, 32], strides = [1, 1]} : vector<10x128xbf16> to vector<10x32xbf16>
    "tpu.trace_start"() <{level = 10 : i32, message = "nd,md->nm"}> : () -> ()
    %cst_104 = arith.constant dense<0.000000e+00> : vector<10x10xf32>
    %279 = tpu.matmul %276, %277, %cst_104 {dimension_numbers = #tpu.dot_dimension_numbers<[1], [1], [0], [0], [0, 0, 1, 0], [], []>} : vector<10x8xbf16>, vector<10x8xbf16>, vector<10x10xf32> -> vector<10x10xf32>
    "tpu.trace_stop"() : () -> ()
    %280 = arith.addf %279, %6 : vector<10x10xf32>
    %cst_105 = arith.constant dense<0xFF800000> : vector<10xf32>
    %281 = vector.multi_reduction <maximumf>, %280, %cst_105 [1] : vector<10x10xf32> to vector<10xf32>
    %282 = vector.shape_cast %281 : vector<10xf32> to vector<10x1xf32>
    %283 = vector.broadcast %282 : vector<10x1xf32> to vector<10x10xf32>
    %284 = arith.subf %280, %283 : vector<10x10xf32>
    %285 = math.exp %284 : vector<10x10xf32>
    %cst_106 = arith.constant dense<0.000000e+00> : vector<10xf32>
    %286 = vector.multi_reduction <add>, %285, %cst_106 [1] : vector<10x10xf32> to vector<10xf32>
    %287 = vector.shape_cast %286 : vector<10xf32> to vector<10x1xf32>
    %288 = tpu.reciprocal %287 {approx = true} : vector<10x1xf32> -> vector<10x1xf32>
    %289 = vector.broadcast %288 : vector<10x1xf32> to vector<10x10xf32>
    %290 = arith.mulf %285, %289 : vector<10x10xf32>
    %291 = arith.truncf %290 : vector<10x10xf32> to vector<10x10xbf16>
    %cst_107 = arith.constant dense<0.000000e+00> : vector<10x32xf32>
    %292 = tpu.matmul %291, %278, %cst_107 {dimension_numbers = #tpu.dot_dimension_numbers<[1], [0], [0], [1], [0, 0, 1, 1], [], []>} : vector<10x10xbf16>, vector<10x32xbf16>, vector<10x32xf32> -> vector<10x32xf32>
    %293 = arith.addf %275, %292 : vector<10x32xf32>
    %294 = arith.addf %180, %293 : vector<10x32xf32>
    %c1_108 = arith.constant 1 : index
    %c0_109 = arith.constant 0 : index
    %c0_110 = arith.constant 0 : index
    %295 = vector.load %arg8[%c1_108, %c0_109, %c0_110] : memref<2x1x32xf32, #tpu.memory_space<vmem>>, vector<1x1x32xf32>
    %296 = vector.shape_cast %295 : vector<1x1x32xf32> to vector<1x32xf32>
    %297 = vector.broadcast %296 : vector<1x32xf32> to vector<10x32xf32>
    %298 = arith.addf %294, %297 : vector<10x32xf32>
    %c1_111 = arith.constant 1 : index
    %c0_112 = arith.constant 0 : index
    %c0_113 = arith.constant 0 : index
    %299 = vector.load %arg9[%c1_111, %c0_112, %c0_113] : memref<2x1x32xf32, #tpu.memory_space<vmem>>, vector<1x1x32xf32>
    %300 = vector.shape_cast %299 : vector<1x1x32xf32> to vector<1x32xf32>
    %c1_114 = arith.constant 1 : index
    %c0_115 = arith.constant 0 : index
    %c0_116 = arith.constant 0 : index
    %301 = vector.load %arg10[%c1_114, %c0_115, %c0_116] : memref<2x1x32xf32, #tpu.memory_space<vmem>>, vector<1x1x32xf32>
    %302 = vector.shape_cast %301 : vector<1x1x32xf32> to vector<1x32xf32>
    %cst_117 = arith.constant dense<0.000000e+00> : vector<10xf32>
    %303 = vector.multi_reduction <add>, %298, %cst_117 [1] : vector<10x32xf32> to vector<10xf32>
    %304 = vector.shape_cast %303 : vector<10xf32> to vector<10x1xf32>
    %cst_118 = arith.constant 3.200000e+01 : f32
    %305 = vector.broadcast %cst_118 : f32 to vector<10x1xf32>
    %306 = arith.divf %304, %305 : vector<10x1xf32>
    %307 = vector.broadcast %306 : vector<10x1xf32> to vector<10x32xf32>
    %308 = arith.subf %298, %307 : vector<10x32xf32>
    %309 = arith.mulf %308, %308 : vector<10x32xf32>
    %cst_119 = arith.constant dense<0.000000e+00> : vector<10xf32>
    %310 = vector.multi_reduction <add>, %309, %cst_119 [1] : vector<10x32xf32> to vector<10xf32>
    %311 = vector.shape_cast %310 : vector<10xf32> to vector<10x1xf32>
    %cst_120 = arith.constant 3.200000e+01 : f32
    %312 = vector.broadcast %cst_120 : f32 to vector<10x1xf32>
    %313 = arith.divf %311, %312 : vector<10x1xf32>
    %314 = vector.broadcast %306 : vector<10x1xf32> to vector<10x32xf32>
    %315 = arith.subf %298, %314 : vector<10x32xf32>
    %cst_121 = arith.constant 9.99999997E-7 : f32
    %316 = vector.broadcast %cst_121 : f32 to vector<10x1xf32>
    %317 = arith.addf %313, %316 : vector<10x1xf32>
    %318 = math.rsqrt %317 : vector<10x1xf32>
    %319 = vector.broadcast %318 : vector<10x1xf32> to vector<10x32xf32>
    %320 = arith.mulf %315, %319 : vector<10x32xf32>
    %321 = vector.broadcast %300 : vector<1x32xf32> to vector<10x32xf32>
    %322 = arith.mulf %320, %321 : vector<10x32xf32>
    %323 = vector.broadcast %302 : vector<1x32xf32> to vector<10x32xf32>
    %324 = arith.addf %322, %323 : vector<10x32xf32>
    %325 = arith.truncf %324 : vector<10x32xf32> to vector<10x32xbf16>
    %c1_122 = arith.constant 1 : index
    %c0_123 = arith.constant 0 : index
    %c0_124 = arith.constant 0 : index
    %326 = vector.load %arg11[%c1_122, %c0_123, %c0_124] : memref<2x32x128xbf16, #tpu.memory_space<vmem>>, vector<1x32x128xbf16>
    %327 = vector.shape_cast %326 : vector<1x32x128xbf16> to vector<32x128xbf16>
    %cst_125 = arith.constant dense<0.000000e+00> : vector<10x128xf32>
    %328 = tpu.matmul %325, %327, %cst_125 {dimension_numbers = #tpu.dot_dimension_numbers<[1], [0], [0], [1], [0, 0, 1, 1], [], []>} : vector<10x32xbf16>, vector<32x128xbf16>, vector<10x128xf32> -> vector<10x128xf32>
    %c1_126 = arith.constant 1 : index
    %c0_127 = arith.constant 0 : index
    %c0_128 = arith.constant 0 : index
    %329 = vector.load %arg12[%c1_126, %c0_127, %c0_128] : memref<2x1x128xf32, #tpu.memory_space<vmem>>, vector<1x1x128xf32>
    %330 = vector.shape_cast %329 : vector<1x1x128xf32> to vector<1x128xf32>
    %331 = vector.broadcast %330 : vector<1x128xf32> to vector<10x128xf32>
    %332 = arith.addf %328, %331 : vector<10x128xf32>
    %333 = arith.mulf %332, %332 : vector<10x128xf32>
    %334 = arith.mulf %332, %333 : vector<10x128xf32>
    %cst_129 = arith.constant 4.471500e-02 : f32
    %335 = vector.broadcast %cst_129 : f32 to vector<10x128xf32>
    %336 = arith.mulf %335, %334 : vector<10x128xf32>
    %337 = arith.addf %332, %336 : vector<10x128xf32>
    %cst_130 = arith.constant 0.797884583 : f32
    %338 = vector.broadcast %cst_130 : f32 to vector<10x128xf32>
    %339 = arith.mulf %338, %337 : vector<10x128xf32>
    %340 = math.tanh %339 : vector<10x128xf32>
    %cst_131 = arith.constant 1.000000e+00 : f32
    %341 = vector.broadcast %cst_131 : f32 to vector<10x128xf32>
    %342 = arith.addf %341, %340 : vector<10x128xf32>
    %cst_132 = arith.constant 5.000000e-01 : f32
    %343 = vector.broadcast %cst_132 : f32 to vector<10x128xf32>
    %344 = arith.mulf %343, %342 : vector<10x128xf32>
    %345 = arith.mulf %332, %344 : vector<10x128xf32>
    %346 = arith.truncf %345 : vector<10x128xf32> to vector<10x128xbf16>
    %c1_133 = arith.constant 1 : index
    %c0_134 = arith.constant 0 : index
    %c0_135 = arith.constant 0 : index
    %347 = vector.load %arg13[%c1_133, %c0_134, %c0_135] : memref<2x128x32xbf16, #tpu.memory_space<vmem>>, vector<1x128x32xbf16>
    %348 = vector.shape_cast %347 : vector<1x128x32xbf16> to vector<128x32xbf16>
    %cst_136 = arith.constant dense<0.000000e+00> : vector<10x32xf32>
    %349 = tpu.matmul %346, %348, %cst_136 {dimension_numbers = #tpu.dot_dimension_numbers<[1], [0], [0], [1], [0, 0, 1, 1], [], []>} : vector<10x128xbf16>, vector<128x32xbf16>, vector<10x32xf32> -> vector<10x32xf32>
    %350 = arith.addf %298, %349 : vector<10x32xf32>
    %c1_137 = arith.constant 1 : index
    %c0_138 = arith.constant 0 : index
    %c0_139 = arith.constant 0 : index
    %351 = vector.load %arg14[%c1_137, %c0_138, %c0_139] : memref<2x1x32xf32, #tpu.memory_space<vmem>>, vector<1x1x32xf32>
    %352 = vector.shape_cast %351 : vector<1x1x32xf32> to vector<1x32xf32>
    %353 = vector.broadcast %352 : vector<1x32xf32> to vector<10x32xf32>
    %354 = arith.addf %350, %353 : vector<10x32xf32>
    %c0_140 = arith.constant 0 : index
    %c0_141 = arith.constant 0 : index
    %355 = vector.load %arg15[%c0_140, %c0_141] : memref<2x10xf32, #tpu.memory_space<vmem>>, vector<2x10xf32>
    %cst_142 = arith.constant dense<0.000000e+00> : vector<2x32xf32>
    %356 = tpu.matmul %355, %354, %cst_142 {dimension_numbers = #tpu.dot_dimension_numbers<[1], [0], [0], [1], [0, 0, 1, 1], [], []>} : vector<2x10xf32>, vector<10x32xf32>, vector<2x32xf32> -> vector<2x32xf32>
    %c0_143 = arith.constant 0 : index
    %c0_144 = arith.constant 0 : index
    %357 = vector.load %arg16[%c0_143, %c0_144] : memref<1x32xf32, #tpu.memory_space<vmem>>, vector<1x32xf32>
    %c0_145 = arith.constant 0 : index
    %c0_146 = arith.constant 0 : index
    %358 = vector.load %arg17[%c0_145, %c0_146] : memref<1x32xf32, #tpu.memory_space<vmem>>, vector<1x32xf32>
    %cst_147 = arith.constant dense<0.000000e+00> : vector<2xf32>
    %359 = vector.multi_reduction <add>, %356, %cst_147 [1] : vector<2x32xf32> to vector<2xf32>
    %360 = vector.shape_cast %359 : vector<2xf32> to vector<2x1xf32>
    %cst_148 = arith.constant 3.200000e+01 : f32
    %361 = vector.broadcast %cst_148 : f32 to vector<2x1xf32>
    %362 = arith.divf %360, %361 : vector<2x1xf32>
    %363 = vector.broadcast %362 : vector<2x1xf32> to vector<2x32xf32>
    %364 = arith.subf %356, %363 : vector<2x32xf32>
    %365 = arith.mulf %364, %364 : vector<2x32xf32>
    %cst_149 = arith.constant dense<0.000000e+00> : vector<2xf32>
    %366 = vector.multi_reduction <add>, %365, %cst_149 [1] : vector<2x32xf32> to vector<2xf32>
    %367 = vector.shape_cast %366 : vector<2xf32> to vector<2x1xf32>
    %cst_150 = arith.constant 3.200000e+01 : f32
    %368 = vector.broadcast %cst_150 : f32 to vector<2x1xf32>
    %369 = arith.divf %367, %368 : vector<2x1xf32>
    %370 = vector.broadcast %362 : vector<2x1xf32> to vector<2x32xf32>
    %371 = arith.subf %356, %370 : vector<2x32xf32>
    %cst_151 = arith.constant 9.99999997E-7 : f32
    %372 = vector.broadcast %cst_151 : f32 to vector<2x1xf32>
    %373 = arith.addf %369, %372 : vector<2x1xf32>
    %374 = math.rsqrt %373 : vector<2x1xf32>
    %375 = vector.broadcast %374 : vector<2x1xf32> to vector<2x32xf32>
    %376 = arith.mulf %371, %375 : vector<2x32xf32>
    %377 = vector.broadcast %357 : vector<1x32xf32> to vector<2x32xf32>
    %378 = arith.mulf %376, %377 : vector<2x32xf32>
    %379 = vector.broadcast %358 : vector<1x32xf32> to vector<2x32xf32>
    %380 = arith.addf %378, %379 : vector<2x32xf32>
    %381 = arith.truncf %380 : vector<2x32xf32> to vector<2x32xbf16>
    %c0_152 = arith.constant 0 : index
    %c0_153 = arith.constant 0 : index
    %382 = vector.load %arg18[%c0_152, %c0_153] : memref<32x256xbf16, #tpu.memory_space<vmem>>, vector<32x256xbf16>
    %cst_154 = arith.constant dense<0.000000e+00> : vector<2x256xf32>
    %383 = tpu.matmul %381, %382, %cst_154 {dimension_numbers = #tpu.dot_dimension_numbers<[1], [0], [0], [1], [0, 0, 1, 1], [], []>} : vector<2x32xbf16>, vector<32x256xbf16>, vector<2x256xf32> -> vector<2x256xf32>
    %c0_155 = arith.constant 0 : index
    %c0_156 = arith.constant 0 : index
    %384 = vector.load %arg19[%c0_155, %c0_156] : memref<1x256xf32, #tpu.memory_space<vmem>>, vector<1x256xf32>
    %385 = vector.broadcast %384 : vector<1x256xf32> to vector<2x256xf32>
    %386 = arith.addf %383, %385 : vector<2x256xf32>
    %cst_157 = arith.constant 0.000000e+00 : f32
    %387 = vector.broadcast %cst_157 : f32 to vector<2x256xf32>
    %388 = arith.maximumf %386, %387 : vector<2x256xf32>
    %389 = arith.truncf %388 : vector<2x256xf32> to vector<2x256xbf16>
    %c0_158 = arith.constant 0 : index
    %c0_159 = arith.constant 0 : index
    %390 = vector.load %arg20[%c0_158, %c0_159] : memref<256x128xbf16, #tpu.memory_space<vmem>>, vector<256x128xbf16>
    %cst_160 = arith.constant dense<0.000000e+00> : vector<2x128xf32>
    %391 = tpu.matmul %389, %390, %cst_160 {dimension_numbers = #tpu.dot_dimension_numbers<[1], [0], [0], [1], [0, 0, 1, 1], [], []>} : vector<2x256xbf16>, vector<256x128xbf16>, vector<2x128xf32> -> vector<2x128xf32>
    %c0_161 = arith.constant 0 : index
    %c0_162 = arith.constant 0 : index
    %392 = vector.load %arg21[%c0_161, %c0_162] : memref<1x128xf32, #tpu.memory_space<vmem>>, vector<1x128xf32>
    %393 = vector.broadcast %392 : vector<1x128xf32> to vector<2x128xf32>
    %394 = arith.addf %391, %393 : vector<2x128xf32>
    %c0_163 = arith.constant 0 : index
    %c0_164 = arith.constant 0 : index
    %395 = vector.load %arg22[%c0_163, %c0_164] : memref<2x128xf32, #tpu.memory_space<vmem>>, vector<2x128xf32>
    tpu.vector_store %arg22[%c0_163, %c0_164], %394 {strides = array<i32>} : memref<2x128xf32, #tpu.memory_space<vmem>>, vector<2x128xf32>,
    return
  }
}

</mosaic_0001>

<bundles_post_ra>
// kernel: dino_classifier_forward.1
= control target key start
LH: loop header
LB: loop body
LE: loop exit
PB: predicated region body
PF: predicated region fallthrough
CT: control target
= control target key end

     0   :  { %s3682_s0 = inlined_call_operand.vmem [shape: f32[10,192], index: 0, kind: input, shape index: {}]   ;;  %s3683_s1 = inlined_call_operand.vmem [shape: bf16[192,32], index: 1, kind: input, shape index: {}]   ;;  %s3684_s2 = inlined_call_operand.vmem [shape: f32[10,32], index: 2, kind: input, shape index: {}]   ;;  %s3685_s3 = inlined_call_operand.vmem [shape: f32[10,10], index: 3, kind: input, shape index: {}]   ;;  %s3686_s4 = inlined_call_operand.vmem [shape: f32[2,1,32], index: 4, kind: input, shape index: {}]   ;;  %s3687_s5 = inlined_call_operand.vmem [shape: f32[2,1,32], index: 5, kind: input, shape index: {}]   ;;  %s3688_s6 = inlined_call_operand.vmem [shape: bf16[2,32,192], index: 6, kind: input, shape index: {}]   ;;  %s3689_s7 = inlined_call_operand.vmem [shape: f32[2,1,192], index: 7, kind: input, shape index: {}]   ;;  %s3690_s8 = inlined_call_operand.vmem [shape: f32[2,1,32], index: 8, kind: input, shape index: {}]   ;;  %s3691_s9 = inlined_call_operand.vmem [shape: f32[2,1,32], index: 9, kind: input, shape index: {}]   ;;  %s3692_s10 = inlined_call_operand.vmem [shape: f32[2,1,32], index: 10, kind: input, shape index: {}]   ;;  %s3693_s11 = inlined_call_operand.vmem [shape: bf16[2,32,128], index: 11, kind: input, shape index: {}]   ;;  %s3694_s12 = inlined_call_operand.vmem [shape: f32[2,1,128], index: 12, kind: input, shape index: {}]   ;;  %s3695_s13 = inlined_call_operand.vmem [shape: bf16[2,128,32], index: 13, kind: input, shape index: {}]   ;;  %s3696_s14 = inlined_call_operand.vmem [shape: f32[2,1,32], index: 14, kind: input, shape index: {}]   ;;  %s3697_s15 = inlined_call_operand.vmem [shape: f32[2,10], index: 15, kind: input, shape index: {}]   ;;  %s3698_s16 = inlined_call_operand.vmem [shape: f32[1,32], index: 16, kind: input, shape index: {}]   ;;  %s3699_s17 = inlined_call_operand.vmem [shape: f32[1,32], index: 17, kind: input, shape index: {}]   ;;  %s3700_s18 = inlined_call_operand.vmem [shape: bf16[32,256], index: 18, kind: input, shape index: {}]   ;;  %s3701_s19 = inlined_call_operand.vmem [shape: f32[1,256], index: 19, kind: input, shape index: {}]   ;;  %s3702_s20 = inlined_call_operand.vmem [shape: bf16[256,128], index: 20, kind: input, shape index: {}]   ;;  %s3703_s21 = inlined_call_operand.vmem [shape: f32[1,128], index: 21, kind: input, shape index: {}]   ;;  %s3704_s22 = inlined_call_operand.hbm [shape: f32[2,128], index: 22, kind: output, shape index: {}]  }
   0x1   :  { %3717 = sst [smem:[#allocation5_spill]] %s3682_s0 }
   0x2   :  { %3718 = sst [smem:[#allocation6_spill]] %s3683_s1 }
   0x3   :  { %3719 = sst [smem:[#allocation7_spill]] %s3684_s2 }
   0x4   :  { %3720 = sst [smem:[#allocation8_spill]] %s3685_s3 }
   0x5   :  { %3721 = sst [smem:[#allocation9_spill]] %s3686_s4 }
   0x6   :  { %3722 = sst [smem:[#allocation10_spill]] %s3687_s5 }
   0x7   :  { %3723 = sst [smem:[#allocation11_spill]] %s3688_s6 }
   0x8   :  { %s3724_s29 = sld [smem:[#allocation6_spill]]  ;;  %v2958_v1 = vmov 0   ;;  %s3725_s25 = sld [smem:[#allocation5_spill]]  ;;  %vm177_vm0 = vcmask 523264  }
   0x9   :  { %181 = vmatprep.subr.bf16.mxu0 %v2958_v1 }
   0xe   :  { %v2778_v0 = vld [vmem:[%s3724_s29] sm:$0xff]   ;;  %v2779_v2 = vld [vmem:[%s3724_s29 + $0x8] sm:$0xff]   ;;  %v2780_v3 = vld [vmem:[%s3724_s29 + $0x10] sm:$0xff]  }
   0xf   :  { %182 = vmatpush1.bf16.msra.mxu0 %v2778_v0  ;;  %v2781_v4 = vld [vmem:[%s3724_s29 + $0x18] sm:$0xff]   ;;  %v74_v5 = vld [vmem:[%s3725_s25 + $0x8] sm:$0xff]  ;;  %v2782_v7 = vld [vmem:[%s3724_s29 + $0x20] sm:$0xff]  }
  0x10   :  { %183 = vmatprep.subr.bf16.mxu0 %v2958_v1  ;;  %v76_v6 = vld [vmem:[%s3725_s25 + $0x18] sm:$0x3]  ;;  %v2783_v9 = vld [vmem:[%s3724_s29 + $0x28] sm:$0xff]   ;;  %v2784_v10 = vld [vmem:[%s3724_s29 + $0x30] sm:$0xff]  }
  0x11   :  { %v78_v8 = vpack.c.bf16 %v76_v6, %v74_v5  ;;  %v2785_v11 = vld [vmem:[%s3724_s29 + $0x38] sm:$0xff]   ;;  %v2786_v12 = vld [vmem:[%s3724_s29 + $0x40] sm:$0xff]   ;;  %v2787_v13 = vld [vmem:[%s3724_s29 + $0x48] sm:$0xff]  }
  0x12   :  { %v2788_v14 = vld [vmem:[%s3724_s29 + $0x50] sm:$0xff]  }
  0x13   :  { %184 = vmatpush1.bf16.msra.mxu0 %v2779_v2  ;;  %2398 = vmatprep.mubr.msk.bf16.mxu0 %vm177_vm0, %v78_v8 }
  0x14   :  { %185 = vmatprep.subr.bf16.mxu0 %v2958_v1 }
  0x17   :  { %186 = vmatpush1.bf16.msra.mxu0 %v2780_v3 }
  0x18   :  { %187 = vmatprep.subr.bf16.mxu0 %v2958_v1 }
  0x1b   :  { %188 = vmatpush1.bf16.msra.mxu0 %v2781_v4 }
  0x1c   :  { %189 = vmatprep.subr.bf16.mxu0 %v2958_v1 }
  0x1f   :  { %190 = vmatpush1.bf16.msra.mxu0 %v2782_v7 }
  0x20   :  { %191 = vmatprep.subr.bf16.mxu0 %v2958_v1 }
  0x23   :  { %192 = vmatpush1.bf16.msra.mxu0 %v2783_v9 }
  0x24   :  { %193 = vmatprep.subr.bf16.mxu0 %v2958_v1 }
  0x27   :  { %194 = vmatpush1.bf16.msra.mxu0 %v2784_v10 }
  0x28   :  { %195 = vmatprep.subr.bf16.mxu0 %v2958_v1 }
  0x2b   :  { %196 = vmatpush1.bf16.msra.mxu0 %v2785_v11 }
  0x2c   :  { %197 = vmatprep.subr.bf16.mxu0 %v2958_v1 }
  0x2f   :  { %198 = vmatpush1.bf16.msra.mxu0 %v2786_v12 }
  0x30   :  { %199 = vmatprep.subr.bf16.mxu0 %v2958_v1 }
  0x33   :  { %200 = vmatpush1.bf16.msra.mxu0 %v2787_v13 }
  0x34   :  { %201 = vmatprep.subr.bf16.mxu0 %v2958_v1 }
  0x35   :  { %27 = vsyncpa [#allocation3], 0  ;;  %v2789_v15 = vld [vmem:[%s3724_s29 + $0x58] sm:$0xff]   ;;  %v73_v16 = vld [vmem:[%s3725_s25] sm:$0xff]  ;;  %s3726_s24 = sld [smem:[#allocation7_spill]]  ;;  %vm226_vm1 = vcmask 261120   ;;  %v278_v61 = vlaneseq }
  0x36   :  { %v75_v17 = vld [vmem:[%s3725_s25 + $0x10] sm:$0x3]  ;;  %vm230_vm2 = vcmask 254976   ;;  %s3727_s2 = sld [smem:[#allocation11_spill]]  ;;  %s3728_s5 = sld [smem:[#allocation9_spill]]  ;;  %v2959_v60 = vmov 0.0  }
  0x37   :  { %202 = vmatpush1.bf16.msra.mxu0 %v2788_v14  ;;  %v77_v18 = vpack.c.bf16 %v75_v17, %v73_v16  ;;  %s3729_s6 = sld [smem:[#allocation10_spill]]  ;;  %2600 = vmatprep.subr.bf16.mxu1 %v2959_v60  ;;  %v279_v62 = vshrl.u32 %v278_v61, 7  ;;  %v276_v0 = vld [vmem:[%s3689_s7] sm:$0x3]  ;;  %vm2960_vm3 = vmmov 0   ;;  %vm511_vm4 = vcmask 1044480  }
  0x38   :  { %203 = vmatprep.subr.bf16.mxu0 %v2958_v1  ;;  %2602 = vmatprep.mubr.msk.bf16.mxu1 %vm2960_vm3, %v2959_v60  ;;  %s2961_s27 = smov 88   ;;  %s2962_s3 = smov 96   ;;  %vm359_vm5 = vcmask 64512   ;;  %vm407_vm6 = vcmask 80896   ;;  %vm411_vm7 = vcmask 74752   ;;  %vm2008_vm8 = vcmask 1041408  }
  0x39   :  { %v3188_v63 = vsub.s32 0, %v279_v62  ;;  %v3193_v2 = vsub.s32 1, %v279_v62  ;;  %s2963_s28 = smov 120   ;;  %s3730_s0 = sld [smem:[#allocation8_spill]]  ;;  %vm2971_vm9 = vmmov 1  }
  0x3a   :  { %s2965_s29 = smov 80   ;;  %s3714_s25 = smov 112   ;;  %vm2761_vm10 = vmpackc.low %vm2008_vm8, %vm2971_vm9 }
  0x3b   :  { %204 = vmatpush1.bf16.msra.mxu0 %v2789_v15  ;;  %v103_v19 = vld [vmem:[%s3726_s24] sm:$0xff]  ;;  %v104_v21 = vld [vmem:[%s3726_s24 + $0x8] sm:$0x3]  ;;  %v281_v3 = vrot.slane %v276_v0, %v3188_v63  ;;  %v285_v5 = vrot.slane %v276_v0, %v3193_v2  ;;  %s3715_s24 = smov 32   ;;  %s3712_s26 = smov 64  }
  0x3c   :  { %v2792_v39 = vld [vmem:[%s3727_s2 + $0x4] ss:$8 sps:$4 sm:$0xff]   ;;  %v2790_v40 = vld [vmem:[%s3727_s2] ss:$8 sps:$4 sm:$0xff]   ;;  %v2793_v41 = vld [vmem:[%s3727_s2 + $0x10] ss:$8 sps:$4 sm:$0xff]  }
  0x3d   :  { %311 = vmatprep.subr.bf16.mxu0 %v2792_v39  ;;  %v2795_v42 = vld [vmem:[%s3727_s2 + $0x14] ss:$8 sps:$4 sm:$0xff]   ;;  %v2399_v51 = vld [vmem:[%s3728_s5] ss:$0 sm:$0xff]  ;;  %s3713_s30 = smov 72   ;;  %s3716_s4 = smov 104  }
  0x3e   :  { %214 = vmatmul.mubr.bf16.vlgmr.msra.gmra.mrb[0].mxu0 %v77_v18  ;;  %v2400_v55 = vld [vmem:[%s3729_s6] ss:$0 sm:$0xff]  ;;  %s2972_s23 = smov [#allocation2]  }
  0x3f   :  { %343 = vmatprep.mubr.bf16.mxu0 %v2958_v1  ;;  %312 = vmatpush1.bf16.msra.mxu0 %v2790_v40 }
  0x40   :  { %313 = vmatprep.subr.bf16.mxu0 %v2795_v42 }
  0x43   :  { %314 = vmatpush1.bf16.msra.mxu0 %v2793_v41 }
  0x44   :  { %2630 = vmatprep.subr.bf16.mxu0 %v2959_v60 }
 0x111   :  { %v215_v20 = vpop.f32.mrb[0].mxu0 }
 0x112   :  { %v3155_v22 = vadd.f32 %v215_v20, %v103_v19  ;;  %v217_v23 = vpop.f32.mrb[1].mxu0 }
 0x113   :  { %v218_v24 = vpop.f32.mrb[2].mxu0 }
 0x114   :  { %v3157_v25 = vadd.f32 %v218_v24, %v104_v21  ;;  %v220_v26 = vpop.f32.mrb[3].mxu0  ;;  %v227_v27 = vsel %vm226_vm1, %v3155_v22, 0.0 }
 0x115   :  { %228 = vadd.xlane.f32.xlu0 %v227_v27  ;;  %v3228_v27 = vld [vmem:[%s3730_s0] sm:$0xff] }
 0x116   :  { %v231_v28 = vsel %vm230_vm2, %v3157_v25, 0.0 }
 0x119   :  { %232 = vadd.xlane.f32.xlu0 %v231_v28 }
 0x1a2   :  { %v229_v29 = vpop.xlane.xlu0 %228 }
 0x1a3   :  { %v235_v30 = vmul.f32 0.03125, %v229_v29 }
 0x1a5   :  { %v237_v31 = vsub.f32 %v3155_v22, %v235_v30 }
 0x1a6   :  { %v233_v32 = vpop.xlane.xlu0 %232 }
 0x1a7   :  { %v236_v33 = vmul.f32 0.03125, %v233_v32  ;;  %v239_v34 = vmul.f32 %v237_v31, %v237_v31 }
 0x1a9   :  { %v238_v35 = vsub.f32 %v3157_v25, %v236_v33  ;;  %v241_v36 = vsel %vm226_vm1, %v239_v34, 0.0 }
 0x1aa   :  { %242 = vadd.xlane.f32.xlu1 %v241_v36 }
 0x1ab   :  { %v240_v37 = vmul.f32 %v238_v35, %v238_v35 }
 0x1ad   :  { %v244_v38 = vsel %vm230_vm2, %v240_v37, 0.0 }
 0x1ae   :  { %245 = vadd.xlane.f32.xlu1 %v244_v38 }
 0x237   :  { %v243_v43 = vpop.xlane.xlu1 %242 }
 0x238   :  { %v247_v44 = vmul.f32 0.03125, %v243_v43 }
 0x23a   :  { %v249_v45 = vadd.f32 1e-06, %v247_v44 }
 0x23b   :  { %v246_v46 = vpop.xlane.xlu1 %245 }
 0x23c   :  { %2844 = vrsqrt.f32 %v249_v45  ;;  %v248_v47 = vmul.f32 0.03125, %v246_v46 }
 0x23e   :  { %v250_v48 = vadd.f32 1e-06, %v248_v47 }
 0x240   :  { %2846 = vrsqrt.f32 %v250_v48 }
 0x246   :  { %v2845_v49 = vpop.eup %2844 }
 0x247   :  { %v253_v50 = vmul.f32 %v2845_v49, %v237_v31  ;;  %v3234_v31 = vld [vmem:[%s3730_s0 + $0x8] sm:$0x3] }
 0x249   :  { %v261_v53 = vmul.f32 %v2399_v51, %v253_v50 }
 0x24a   :  { %v2847_v52 = vpop.eup %2846 }
 0x24b   :  { %v254_v54 = vmul.f32 %v2847_v52, %v238_v35  ;;  %v269_v57 = vadd.f32 %v2400_v55, %v261_v53 }
 0x24d   :  { %v262_v56 = vmul.f32 %v2399_v51, %v254_v54 }
 0x24f   :  { %v270_v58 = vadd.f32 %v2400_v55, %v262_v56 }
 0x251   :  { %v271_v59 = vpack.c.bf16 %v270_v58, %v269_v57 }
 0x253   :  { %2405 = vmatmul.mubr.msk.bf16.vlgmr.msra.gmra.mrb[4].mxu0 %vm226_vm1, %v271_v59 }
 0x254   :  { %2632 = vmatprep.mubr.msk.bf16.mxu0 %vm2960_vm3, %v2959_v60 }
 0x326   :  { %v345_v4 = vpop.f32.mrb[4].mxu0 }
 0x327   :  { %v347_v6 = vpop.f32.mrb[5].mxu0  ;;  %v346_v8 = vadd.f32 %v345_v4, %v281_v3 }
 0x328   :  { %v349_v7 = vpop.f32.mrb[6].mxu0  ;;  %v348_v11 = vadd.f32 %v347_v6, %v285_v5 }
 0x329   :  { %v350_v9 = vadd.f32 %v349_v7, %v281_v3  ;;  %v351_v10 = vpop.f32.mrb[7].mxu0 }
 0x32a   :  { %v352_v12 = vadd.f32 %v351_v10, %v285_v5 }
 0x32b   :  { %v3201_v13 = vpack.c.bf16 %v350_v9, %v346_v8 }
 0x32c   :  { %v3203_v14 = vpack.c.bf16 %v352_v12, %v348_v11 }
 0x32d   :  { %434 = vrot.lane.b32.xlu1 %v3201_v13, %s2961_s27  ;;  %357 = vrot.lane.b32.xlu0 %v3201_v13, %s2962_s3 }
 0x32e   :  { %v683_v15 = vsel %vm511_vm4, %v3203_v14, 0 }
 0x32f   :  { %2631 = vmatpush3.bf16.msra.mxu0 %v683_v15 }
 0x330   :  { %2642 = vmatprep.subr.bf16.mxu0 %v2959_v60 }
 0x331   :  { %432 = vrot.lane.b32.xlu1 %v3201_v13, %s2963_s28 }
 0x39f   :  { %v358_v16 = vpop.permute.xlu0 %357  ;;  %v435_v18 = vpop.permute.xlu1 %434 }
 0x3a0   :  { %v364_v17 = vsel %vm359_vm5, %v358_v16, 0  ;;  %v440_v19 = vsel %vm359_vm5, %v435_v18, 0 }
 0x3a1   :  { %2601 = vmatpush3.bf16.xpose.msra.mxu1 %v364_v17 }
 0x3a2   :  { %2606 = vmatprep.subr.bf16.mxu1 %v2959_v60 }
 0x3a3   :  { %v433_v20 = vpop.permute.xlu1 %432 }
 0x3a8   :  { %2603 = vmatmul.mubr.msk.bf16.vlgmr.msra.gmra.mrb[0].mxu1 %vm359_vm5, %v3201_v13 }
 0x3a9   :  { %2607 = vmatpush3.bf16.xpose.msra.mxu1 %v440_v19  ;;  %2608 = vmatprep.mubr.msk.bf16.mxu1 %vm2960_vm3, %v2959_v60 }
 0x3aa   :  { %2612 = vmatprep.subr.bf16.mxu1 %v2959_v60 }
 0x3b0   :  { %2609 = vmatmul.mubr.msk.bf16.vlgmr.msra.gmra.mrb[4].mxu1 %vm359_vm5, %v433_v20 }
 0x3b1   :  { %2614 = vmatprep.mubr.msk.bf16.mxu1 %vm2960_vm3, %v2959_v60 }
 0x47b   :  { %v400_v21 = vpop.f32.mrb[0].mxu1 }
 0x47c   :  { %v2604_v23 = vpop.f32.mrb[1].mxu1  ;;  %v401_v36 = vadd.f32 %v400_v21, %v3228_v27 }
 0x47d   :  { %v403_v24 = vpop.f32.mrb[2].mxu1 }
 0x47e   :  { %v2605_v26 = vpop.f32.mrb[3].mxu1  ;;  %v404_v38 = vadd.f32 %v403_v24, %v3234_v31  ;;  %v408_v39 = vsel %vm407_vm6, %v401_v36, -inf }
 0x480   :  { %v412_v40 = vsel %vm411_vm7, %v404_v38, -inf }
 0x483   :  { %v476_v28 = vpop.f32.mrb[4].mxu1 }
 0x484   :  { %v477_v29 = vadd.f32 %v476_v28, %v3228_v27  ;;  %v2610_v30 = vpop.f32.mrb[5].mxu1 }
 0x485   :  { %v479_v32 = vpop.f32.mrb[6].mxu1 }
 0x486   :  { %v480_v33 = vadd.f32 %v479_v32, %v3234_v31  ;;  %v2611_v34 = vpop.f32.mrb[7].mxu1  ;;  %v483_v35 = vsel %vm407_vm6, %v477_v29, -inf }
 0x487   :  { %484 = vmax.xlane.f32.xlu1 %v483_v35 }
 0x488   :  { %v486_v37 = vsel %vm411_vm7, %v480_v33, -inf }
 0x489   :  { %487 = vmax.xlane.f32.xlu0 %v486_v37 }
 0x48d   :  { %409 = vmax.xlane.f32.xlu0 %v408_v39 }
 0x491   :  { %413 = vmax.xlane.f32.xlu0 %v412_v40 }
 0x514   :  { %v485_v41 = vpop.xlane.xlu1 %484 }
 0x515   :  { %v489_v43 = vsub.f32 %v477_v29, %v485_v41 }
 0x516   :  { %v488_v42 = vpop.xlane.xlu0 %487 }
 0x517   :  { %v491_v46 = vmul.f32 1.442695, %v489_v43  ;;  %v490_v47 = vsub.f32 %v480_v33, %v488_v42 }
 0x519   :  { %v493_v51 = vmul.f32 1.442695, %v490_v47 }
 0x51a   :  { %v410_v44 = vpop.xlane.xlu0 %409 }
 0x51b   :  { %v415_v45 = vsub.f32 %v401_v36, %v410_v44 }
 0x51d   :  { %v417_v48 = vmul.f32 1.442695, %v415_v45 }
 0x51e   :  { %v414_v49 = vpop.xlane.xlu0 %413 }
 0x51f   :  { %2848 = vpow2.f32 %v417_v48  ;;  %v416_v50 = vsub.f32 %v404_v38, %v414_v49 }
 0x520   :  { %2850 = vpow2.f32 %v491_v46 }
 0x521   :  { %v419_v52 = vmul.f32 1.442695, %v416_v50 }
 0x523   :  { %2852 = vpow2.f32 %v419_v52 }
 0x524   :  { %2854 = vpow2.f32 %v493_v51 }
 0x529   :  { %v2849_v53 = vpop.eup %2848 }
 0x52a   :  { %v421_v54 = vsel %vm407_vm6, %v2849_v53, 0.0  ;;  %v2851_v55 = vpop.eup %2850 }
 0x52b   :  { %422 = vadd.xlane.f32.xlu1 %v421_v54  ;;  %v495_v57 = vsel %vm407_vm6, %v2851_v55, 0.0 }
 0x52d   :  { %v2853_v56 = vpop.eup %2852 }
 0x52e   :  { %v424_v58 = vsel %vm411_vm7, %v2853_v56, 0.0  ;;  %v2855_v59 = vpop.eup %2854 }
 0x52f   :  { %496 = vadd.xlane.f32.xlu1 %v495_v57  ;;  %425 = vadd.xlane.f32.xlu0 %v424_v58  ;;  %v498_v61 = vsel %vm411_vm7, %v2855_v59, 0.0 }
 0x533   :  { %499 = vadd.xlane.f32.xlu0 %v498_v61 }
 0x540   :  { %506 = vrot.lane.b32.xlu1 %v3201_v13, %s3715_s24 }
 0x544   :  { %607 = vrot.lane.b32.xlu1 %v3201_v13, %s2965_s29 }
 0x548   :  { %605 = vrot.lane.b32.xlu1 %v3201_v13, %s3714_s25 }
 0x549   :  { %556 = vrot.lane.b32.xlu0 %v3201_v13, %s3712_s26 }
 0x54c   :  { %730 = vrot.lane.b32.xlu1 %v3201_v13, %s3713_s30 }
 0x54d   :  { %728 = vrot.lane.b32.xlu0 %v3201_v13, %s3716_s4 }
 0x5b8   :  { %v423_v62 = vpop.xlane.xlu1 %422 }
 0x5bc   :  { %v497_v0 = vpop.xlane.xlu1 %496  ;;  %v426_v3 = vpop.xlane.xlu0 %425 }
 0x5bd   :  { %2856 = vrcp.f32 %v497_v0 }
 0x5c0   :  { %v507_v4 = vpop.permute.xlu1 %506  ;;  %v500_v5 = vpop.xlane.xlu0 %499 }
 0x5c1   :  { %v513_v6 = vsel %vm511_vm4, %v507_v4, 0  ;;  %2858 = vrcp.f32 %v500_v5 }
 0x5c2   :  { %2613 = vmatpush3.bf16.msra.mxu1 %v513_v6  ;;  %2860 = vrcp.f32 %v426_v3 }
 0x5c3   :  { %2618 = vmatprep.subr.bf16.mxu1 %v2959_v60  ;;  %2862 = vrcp.f32 %v423_v62 }
 0x5c4   :  { %v557_v11 = vpop.permute.xlu0 %556  ;;  %v608_v18 = vpop.permute.xlu1 %607 }
 0x5c5   :  { %v562_v15 = vsel %vm511_vm4, %v557_v11, 0  ;;  %v613_v23 = vsel %vm359_vm5, %v608_v18, 0 }
 0x5c7   :  { %v2857_v7 = vpop.eup %2856 }
 0x5c8   :  { %v503_v9 = vmul.f32 %v2857_v7, %v2851_v55  ;;  %v606_v21 = vpop.permute.xlu1 %605  ;;  %v729_v28 = vpop.permute.xlu0 %728 }
 0x5cb   :  { %v2859_v8 = vpop.eup %2858 }
 0x5cc   :  { %v504_v10 = vmul.f32 %v2859_v8, %v2855_v59  ;;  %v2861_v13 = vpop.eup %2860  ;;  %v731_v24 = vpop.permute.xlu1 %730 }
 0x5cd   :  { %v2863_v16 = vpop.eup %2862  ;;  %v430_v17 = vmul.f32 %v2861_v13, %v2853_v56  ;;  %v736_v26 = vsel %vm359_vm5, %v731_v24, 0 }
 0x5ce   :  { %v505_v12 = vpack.c.bf16 %v504_v10, %v503_v9  ;;  %v429_v19 = vmul.f32 %v2863_v16, %v2849_v53 }
 0x5d0   :  { %2615 = vmatmul.mubr.msk.bf16.vlgmr.msra.gmra.mrb[8].mxu1 %vm407_vm6, %v505_v12  ;;  %v431_v20 = vpack.c.bf16 %v430_v17, %v429_v19 }
 0x5d1   :  { %2619 = vmatpush3.bf16.msra.mxu1 %v562_v15  ;;  %2620 = vmatprep.mubr.msk.bf16.mxu1 %vm2960_vm3, %v2959_v60 }
 0x5d2   :  { %2624 = vmatprep.subr.bf16.mxu1 %v2959_v60 }
 0x5d8   :  { %2621 = vmatmul.mubr.msk.bf16.vlgmr.msra.gmra.mrb[12].mxu1 %vm407_vm6, %v431_v20 }
 0x5d9   :  { %2626 = vmatprep.mubr.msk.bf16.mxu1 %vm2960_vm3, %v2959_v60 }
 0x5da   :  { %2625 = vmatpush3.bf16.xpose.msra.mxu1 %v613_v23 }
 0x5db   :  { %2636 = vmatprep.subr.bf16.mxu1 %v2959_v60 }
 0x5e1   :  { %2627 = vmatmul.mubr.msk.bf16.vlgmr.msra.gmra.mrb[16].mxu1 %vm359_vm5, %v606_v21 }
 0x5e2   :  { %2637 = vmatpush3.bf16.xpose.msra.mxu1 %v736_v26  ;;  %2638 = vmatprep.mubr.msk.bf16.mxu1 %vm2960_vm3, %v2959_v60 }
 0x5e3   :  { %2648 = vmatprep.subr.bf16.mxu1 %v2959_v60 }
 0x5e9   :  { %2639 = vmatmul.mubr.msk.bf16.vlgmr.msra.gmra.mrb[20].mxu1 %vm359_vm5, %v729_v28 }
 0x5ea   :  { %2652 = vmatprep.mubr.msk.bf16.mxu1 %vm2960_vm3, %v2959_v60 }
 0x6a3   :  { %v549_v29 = vpop.f32.mrb[8].mxu1 }
 0x6a4   :  { %v2616_v30 = vpop.f32.mrb[9].mxu1 }
 0x6a5   :  { %v552_v32 = vpop.f32.mrb[10].mxu1 }
 0x6a6   :  { %v2617_v33 = vpop.f32.mrb[11].mxu1 }
 0x6ab   :  { %v598_v34 = vpop.f32.mrb[12].mxu1 }
 0x6ac   :  { %v3279_v35 = vadd.f32 %v598_v34, %v549_v29  ;;  %v2622_v36 = vpop.f32.mrb[13].mxu1 }
 0x6ad   :  { %v601_v37 = vpop.f32.mrb[14].mxu1 }
 0x6ae   :  { %v3281_v38 = vadd.f32 %v601_v37, %v552_v32  ;;  %v2623_v39 = vpop.f32.mrb[15].mxu1 }
 0x6b4   :  { %v649_v40 = vpop.f32.mrb[16].mxu1 }
 0x6b5   :  { %v650_v41 = vadd.f32 %v649_v40, %v3228_v27  ;;  %v2628_v42 = vpop.f32.mrb[17].mxu1 }
 0x6b6   :  { %v652_v43 = vpop.f32.mrb[18].mxu1 }
 0x6b7   :  { %v653_v44 = vadd.f32 %v652_v43, %v3234_v31  ;;  %v2629_v45 = vpop.f32.mrb[19].mxu1  ;;  %v656_v46 = vsel %vm407_vm6, %v650_v41, -inf }
 0x6b8   :  { %657 = vmax.xlane.f32.xlu1 %v656_v46 }
 0x6b9   :  { %v659_v47 = vsel %vm411_vm7, %v653_v44, -inf }
 0x6ba   :  { %660 = vmax.xlane.f32.xlu0 %v659_v47  ;;  %v2414_v47 = vld [vmem:[%s3690_s8] ss:$0 sm:$0xff] }
 0x6bc   :  { %v772_v48 = vpop.f32.mrb[20].mxu1 }
 0x6bd   :  { %v773_v49 = vadd.f32 %v772_v48, %v3228_v27  ;;  %v2640_v50 = vpop.f32.mrb[21].mxu1 }
 0x6be   :  { %v775_v51 = vpop.f32.mrb[22].mxu1 }
 0x6bf   :  { %v776_v52 = vadd.f32 %v775_v51, %v3234_v31  ;;  %v2641_v53 = vpop.f32.mrb[23].mxu1  ;;  %v779_v54 = vsel %vm407_vm6, %v773_v49, -inf }
 0x6c0   :  { %780 = vmax.xlane.f32.xlu0 %v779_v54 }
 0x6c1   :  { %v782_v55 = vsel %vm411_vm7, %v776_v52, -inf }
 0x6c4   :  { %783 = vmax.xlane.f32.xlu0 %v782_v55 }
 0x745   :  { %v658_v56 = vpop.xlane.xlu1 %657 }
 0x746   :  { %v662_v57 = vsub.f32 %v650_v41, %v658_v56 }
 0x747   :  { %v661_v58 = vpop.xlane.xlu0 %660 }
 0x748   :  { %v664_v59 = vmul.f32 1.442695, %v662_v57  ;;  %v663_v61 = vsub.f32 %v653_v44, %v661_v58 }
 0x74a   :  { %2864 = vpow2.f32 %v664_v59  ;;  %v666_v62 = vmul.f32 1.442695, %v663_v61 }
 0x74c   :  { %2866 = vpow2.f32 %v666_v62 }
 0x74d   :  { %v781_v0 = vpop.xlane.xlu0 %780 }
 0x74e   :  { %v785_v3 = vsub.f32 %v773_v49, %v781_v0 }
 0x750   :  { %v787_v4 = vmul.f32 1.442695, %v785_v3  ;;  %v2796_v3 = vld [vmem:[%s3693_s11] sm:$0xff]  }
 0x751   :  { %v784_v5 = vpop.xlane.xlu0 %783  ;;  %2649 = vmatpush3.bf16.msra.mxu1 %v2796_v3 }
 0x752   :  { %2868 = vpow2.f32 %v787_v4  ;;  %v786_v6 = vsub.f32 %v776_v52, %v784_v5  ;;  %v2797_v4 = vld [vmem:[%s3693_s11 + $0x8] sm:$0xff]   ;;  %2650 = vmatprep.subr.bf16.mxu1 %v2959_v60 }
 0x754   :  { %v2865_v7 = vpop.eup %2864  ;;  %v789_v8 = vmul.f32 1.442695, %v786_v6 }
 0x755   :  { %v668_v9 = vsel %vm407_vm6, %v2865_v7, 0.0  ;;  %2651 = vmatpush3.bf16.msra.mxu1 %v2797_v4 }
 0x756   :  { %v2867_v10 = vpop.eup %2866  ;;  %2870 = vpow2.f32 %v789_v8  ;;  %669 = vadd.xlane.f32.xlu1 %v668_v9 }
 0x757   :  { %v671_v11 = vsel %vm411_vm7, %v2867_v10, 0.0 }
 0x758   :  { %672 = vadd.xlane.f32.xlu0 %v671_v11 }
 0x75c   :  { %v2869_v12 = vpop.eup %2868 }
 0x75d   :  { %v791_v13 = vsel %vm407_vm6, %v2869_v12, 0.0 }
 0x75e   :  { %792 = vadd.xlane.f32.xlu1 %v791_v13  ;;  %v2415_v13 = vld [vmem:[%s3691_s9] ss:$0 sm:$0xff] }
 0x760   :  { %v2871_v15 = vpop.eup %2870 }
 0x761   :  { %v794_v16 = vsel %vm411_vm7, %v2871_v15, 0.0 }
 0x762   :  { %795 = vadd.xlane.f32.xlu0 %v794_v16 }
 0x76f   :  { %803 = vrot.lane.b32.xlu1 %v3203_v14, %s2962_s3 }
 0x7e3   :  { %v670_v17 = vpop.xlane.xlu1 %669 }
 0x7e4   :  { %2872 = vrcp.f32 %v670_v17 }
 0x7e5   :  { %v673_v18 = vpop.xlane.xlu0 %672 }
 0x7e6   :  { %2874 = vrcp.f32 %v673_v18  ;;  %v2416_v18 = vld [vmem:[%s3692_s10] ss:$0 sm:$0xff] }
 0x7eb   :  { %v793_v19 = vpop.xlane.xlu1 %792 }
 0x7ec   :  { %2876 = vrcp.f32 %v793_v19 }
 0x7ee   :  { %v2873_v20 = vpop.eup %2872 }
 0x7ef   :  { %v796_v21 = vpop.xlane.xlu0 %795  ;;  %v676_v24 = vmul.f32 %v2873_v20, %v2865_v7  ;;  %v804_v28 = vpop.permute.xlu1 %803 }
 0x7f0   :  { %v2875_v23 = vpop.eup %2874  ;;  %2878 = vrcp.f32 %v796_v21  ;;  %v809_v30 = vsel %vm511_vm4, %v804_v28, 0  ;;  %v2800_v28 = vld [vmem:[%s3695_s13 + $0x10] sm:$0xff]  }
 0x7f1   :  { %v677_v26 = vmul.f32 %v2875_v23, %v2867_v10 }
 0x7f3   :  { %v678_v29 = vpack.c.bf16 %v677_v26, %v676_v24  ;;  %v2798_v24 = vld [vmem:[%s3695_s13] sm:$0xff]   ;;  %v2799_v26 = vld [vmem:[%s3695_s13 + $0x8] sm:$0xff]  }
 0x7f5   :  { %2633 = vmatmul.mubr.msk.bf16.vlgmr.msra.gmra.mrb[8].mxu0 %vm407_vm6, %v678_v29  ;;  %v2801_v29 = vld [vmem:[%s3695_s13 + $0x18] sm:$0xff]  }
 0x7f6   :  { %2643 = vmatpush3.bf16.msra.mxu0 %v809_v30  ;;  %2644 = vmatprep.mubr.msk.bf16.mxu0 %vm2960_vm3, %v2959_v60  ;;  %v2877_v14 = vpop.eup %2876  ;;  %v2802_v30 = vld [vmem:[%s3695_s13 + $0x20] sm:$0xff]  }
 0x7f7   :  { %2656 = vmatprep.subr.bf16.mxu0 %v2959_v60  ;;  %v799_v33 = vmul.f32 %v2877_v14, %v2869_v12  ;;  %v2803_v14 = vld [vmem:[%s3695_s13 + $0x28] sm:$0xff]  }
 0x7fa   :  { %v2879_v32 = vpop.eup %2878 }
 0x7fb   :  { %v800_v34 = vmul.f32 %v2879_v32, %v2871_v15  ;;  %v2804_v32 = vld [vmem:[%s3695_s13 + $0x30] sm:$0xff]  }
 0x7fd   :  { %v801_v36 = vpack.c.bf16 %v800_v34, %v799_v33  ;;  %v2805_v33 = vld [vmem:[%s3695_s13 + $0x38] sm:$0xff]   ;;  %v2417_v34 = vld [vmem:[%s3694_s12] ss:$0 sm:$0xff] }
 0x7ff   :  { %2645 = vmatmul.mubr.msk.bf16.vlgmr.msra.gmra.mrb[12].mxu0 %vm407_vm6, %v801_v36 }
 0x800   :  { %2672 = vmatprep.mubr.msk.bf16.mxu0 %vm2960_vm3, %v2959_v60  ;;  %2657 = vmatpush3.bf16.msra.mxu0 %v2798_v24  ;;  %v2811_v24 = vld [vmem:[%s3727_s2 + $0x34] ss:$8 sps:$4 sm:$0xff]  }
 0x801   :  { %2658 = vmatprep.subr.bf16.mxu0 %v2959_v60 }
 0x804   :  { %2659 = vmatpush3.bf16.msra.mxu0 %v2799_v26 }
 0x805   :  { %2660 = vmatprep.subr.bf16.mxu0 %v2959_v60 }
 0x808   :  { %2661 = vmatpush3.bf16.msra.mxu0 %v2800_v28 }
 0x809   :  { %2662 = vmatprep.subr.bf16.mxu0 %v2959_v60 }
 0x80c   :  { %2663 = vmatpush3.bf16.msra.mxu0 %v2801_v29 }
 0x80d   :  { %2664 = vmatprep.subr.bf16.mxu0 %v2959_v60 }
 0x810   :  { %2665 = vmatpush3.bf16.msra.mxu0 %v2802_v30 }
 0x811   :  { %2666 = vmatprep.subr.bf16.mxu0 %v2959_v60 }
 0x814   :  { %2667 = vmatpush3.bf16.msra.mxu0 %v2803_v14 }
 0x815   :  { %2668 = vmatprep.subr.bf16.mxu0 %v2959_v60 }
 0x818   :  { %2669 = vmatpush3.bf16.msra.mxu0 %v2804_v32 }
 0x819   :  { %2670 = vmatprep.subr.bf16.mxu0 %v2959_v60 }
 0x81c   :  { %2671 = vmatpush3.bf16.msra.mxu0 %v2805_v33 }
 0x81d   :  { %2694 = vmatprep.subr.bf16.mxu0 %v2959_v60 }
 0x8c8   :  { %v719_v37 = vpop.f32.mrb[8].mxu0 }
 0x8c9   :  { %v726_v39 = vadd.f32 %v719_v37, %v3279_v35  ;;  %v2634_v40 = vpop.f32.mrb[9].mxu0 }
 0x8ca   :  { %v722_v41 = vpop.f32.mrb[10].mxu0 }
 0x8cb   :  { %v727_v42 = vadd.f32 %v722_v41, %v3281_v38  ;;  %v2635_v43 = vpop.f32.mrb[11].mxu0 }
 0x8d2   :  { %v845_v44 = vpop.f32.mrb[12].mxu0 }
 0x8d3   :  { %v852_v45 = vadd.f32 %v845_v44, %v726_v39  ;;  %v2646_v46 = vpop.f32.mrb[13].mxu0 }
 0x8d4   :  { %v848_v48 = vpop.f32.mrb[14].mxu0 }
 0x8d5   :  { %v854_v49 = vadd.f32 %v852_v45, %v3155_v22  ;;  %v853_v50 = vadd.f32 %v848_v48, %v727_v42  ;;  %v2647_v51 = vpop.f32.mrb[15].mxu0 }
 0x8d7   :  { %v3311_v52 = vadd.f32 %v2414_v47, %v854_v49  ;;  %v855_v35 = vadd.f32 %v853_v50, %v3157_v25 }
 0x8d9   :  { %v3314_v53 = vadd.f32 %v2414_v47, %v855_v35  ;;  %v867_v38 = vsel %vm226_vm1, %v3311_v52, 0.0 }
 0x8da   :  { %868 = vadd.xlane.f32.xlu0 %v867_v38 }
 0x8db   :  { %v870_v54 = vsel %vm230_vm2, %v3314_v53, 0.0 }
 0x8de   :  { %871 = vadd.xlane.f32.xlu0 %v870_v54 }
 0x967   :  { %v869_v55 = vpop.xlane.xlu0 %868 }
 0x968   :  { %v873_v56 = vmul.f32 0.03125, %v869_v55 }
 0x96a   :  { %v875_v22 = vsub.f32 %v3311_v52, %v873_v56 }
 0x96b   :  { %v872_v57 = vpop.xlane.xlu0 %871 }
 0x96c   :  { %v874_v58 = vmul.f32 0.03125, %v872_v57  ;;  %v877_v59 = vmul.f32 %v875_v22, %v875_v22 }
 0x96e   :  { %v876_v61 = vsub.f32 %v3314_v53, %v874_v58  ;;  %v879_v25 = vsel %vm226_vm1, %v877_v59, 0.0 }
 0x96f   :  { %880 = vadd.xlane.f32.xlu0 %v879_v25 }
 0x970   :  { %v878_v62 = vmul.f32 %v876_v61, %v876_v61 }
 0x972   :  { %v882_v0 = vsel %vm230_vm2, %v878_v62, 0.0  ;;  %v2429_v62 = vld [vmem:[%s3696_s14] ss:$0 sm:$0xff] }
 0x973   :  { %883 = vadd.xlane.f32.xlu0 %v882_v0 }
 0x9fc   :  { %v881_v5 = vpop.xlane.xlu0 %880 }
 0x9fd   :  { %v885_v6 = vmul.f32 0.03125, %v881_v5 }
 0x9ff   :  { %v887_v7 = vadd.f32 1e-06, %v885_v6 }
 0xa00   :  { %v884_v8 = vpop.xlane.xlu0 %883 }
 0xa01   :  { %2880 = vrsqrt.f32 %v887_v7  ;;  %v886_v9 = vmul.f32 0.03125, %v884_v8 }
 0xa03   :  { %v888_v10 = vadd.f32 1e-06, %v886_v9 }
 0xa05   :  { %2882 = vrsqrt.f32 %v888_v10 }
 0xa0b   :  { %v2881_v11 = vpop.eup %2880 }
 0xa0c   :  { %v891_v12 = vmul.f32 %v2881_v11, %v875_v22 }
 0xa0e   :  { %v899_v16 = vmul.f32 %v2415_v13, %v891_v12 }
 0xa0f   :  { %v2883_v15 = vpop.eup %2882 }
 0xa10   :  { %v892_v17 = vmul.f32 %v2883_v15, %v876_v61  ;;  %v907_v20 = vadd.f32 %v2416_v18, %v899_v16 }
 0xa12   :  { %v900_v19 = vmul.f32 %v2415_v13, %v892_v17 }
 0xa14   :  { %v908_v21 = vadd.f32 %v2416_v18, %v900_v19 }
 0xa16   :  { %v909_v23 = vpack.c.bf16 %v908_v21, %v907_v20  ;;  %v2808_v20 = vld [vmem:[%s3727_s2 + $0x24] ss:$8 sps:$4 sm:$0xff]   ;;  %v2806_v21 = vld [vmem:[%s3727_s2 + $0x20] ss:$8 sps:$4 sm:$0xff]  }
 0xa17   :  { %1200 = vmatprep.subr.bf16.mxu1 %v2808_v20 }
 0xa18   :  { %2653 = vmatmul.mubr.msk.bf16.vlgmr.msra.gmra.mrb[24].mxu1 %vm226_vm1, %v909_v23  ;;  %v2809_v23 = vld [vmem:[%s3727_s2 + $0x30] ss:$8 sps:$4 sm:$0xff]  }
 0xa19   :  { %1232 = vmatprep.mubr.bf16.mxu1 %v2958_v1  ;;  %1201 = vmatpush1.bf16.msra.mxu1 %v2806_v21 }
 0xa1a   :  { %1202 = vmatprep.subr.bf16.mxu1 %v2811_v24 }
 0xa1d   :  { %1203 = vmatpush1.bf16.msra.mxu1 %v2809_v23 }
 0xa1e   :  { %2676 = vmatprep.subr.bf16.mxu1 %v2959_v60 }
 0xaeb   :  { %v970_v36 = vpop.f32.mrb[24].mxu1 }
 0xaec   :  { %v971_v37 = vadd.f32 %v2417_v34, %v970_v36  ;;  %v2654_v39 = vpop.f32.mrb[25].mxu1  ;;  %v2432_v36 = vld [vmem:[%s3728_s5 + $0x1] ss:$0 sm:$0xff]  ;;  %s3732_s5 = smov 32  }
 0xaed   :  { %v973_v40 = vpop.f32.mrb[26].mxu1 }
 0xaee   :  { %v977_v41 = vmul.f32 %v971_v37, %v971_v37  ;;  %v974_v42 = vadd.f32 %v2417_v34, %v973_v40  ;;  %v2655_v43 = vpop.f32.mrb[27].mxu1 }
 0xaf0   :  { %v979_v44 = vmul.f32 %v977_v41, %v971_v37  ;;  %v978_v45 = vmul.f32 %v974_v42, %v974_v42  ;;  %v2433_v41 = vld [vmem:[%s3729_s6 + $0x1] ss:$0 sm:$0xff]  ;;  %s3733_s6 = smov 112  }
 0xaf2   :  { %v981_v46 = vmul.f32 0.044715, %v979_v44  ;;  %v980_v47 = vmul.f32 %v978_v45, %v974_v42 }
 0xaf4   :  { %v983_v48 = vadd.f32 %v981_v46, %v971_v37  ;;  %v982_v49 = vmul.f32 0.044715, %v980_v47  ;;  %v2438_v46 = vld [vmem:[%s3689_s7 + $0x2] sm:$0x3]  ;;  %s3731_s7 = smov 104  }
 0xaf5   :  { %v1170_v47 = vrot.slane %v2438_v46, %v3188_v63 }
 0xaf6   :  { %v985_v50 = vmul.f32 0.7978846, %v983_v48  ;;  %v984_v51 = vadd.f32 %v982_v49, %v974_v42  ;;  %v1174_v49 = vrot.slane %v2438_v46, %v3193_v2 }
 0xaf8   :  { %2884 = vtanh.f32 %v985_v50  ;;  %v986_v35 = vmul.f32 0.7978846, %v984_v51 }
 0xafa   :  { %2886 = vtanh.f32 %v986_v35 }
 0xb02   :  { %v2885_v38 = vpop.eup %2884 }
 0xb03   :  { %v989_v54 = vadd.f32 1.0, %v2885_v38 }
 0xb04   :  { %v2887_v55 = vpop.eup %2886 }
 0xb05   :  { %v991_v56 = vmul.f32 0.5, %v989_v54  ;;  %v990_v22 = vadd.f32 1.0, %v2887_v55 }
 0xb07   :  { %v992_v57 = vmul.f32 0.5, %v990_v22  ;;  %v993_v58 = vmul.f32 %v991_v56, %v971_v37 }
 0xb09   :  { %v994_v59 = vmul.f32 %v992_v57, %v974_v42 }
 0xb0b   :  { %v995_v61 = vpack.c.bf16 %v994_v59, %v993_v58 }
 0xb0d   :  { %2673 = vmatmul.mubr.bf16.vlgmr.msra.gmra.mrb[16].mxu0 %v995_v61 }
 0xb0e   :  { %2696 = vmatprep.mubr.msk.bf16.mxu0 %vm2960_vm3, %v2959_v60 }
 0xbe0   :  { %v1094_v25 = vpop.f32.mrb[16].mxu0 }
 0xbe1   :  { %v1101_v0 = vadd.f32 %v1094_v25, %v3311_v52  ;;  %v2674_v3 = vpop.f32.mrb[17].mxu0 }
 0xbe2   :  { %v1097_v4 = vpop.f32.mrb[18].mxu0 }
 0xbe3   :  { %v3380_v5 = vadd.f32 %v2429_v62, %v1101_v0  ;;  %v1102_v6 = vadd.f32 %v1097_v4, %v3314_v53  ;;  %v2675_v7 = vpop.f32.mrb[19].mxu0 }
 0xbe5   :  { %v3383_v8 = vadd.f32 %v2429_v62, %v1102_v6  ;;  %v1116_v9 = vsel %vm226_vm1, %v3380_v5, 0.0 }
 0xbe6   :  { %1117 = vadd.xlane.f32.xlu1 %v1116_v9 }
 0xbe7   :  { %v1119_v10 = vsel %vm230_vm2, %v3383_v8, 0.0 }
 0xbe8   :  { %1120 = vadd.xlane.f32.xlu0 %v1119_v10 }
 0xc73   :  { %v1118_v11 = vpop.xlane.xlu1 %1117 }
 0xc74   :  { %v1122_v12 = vmul.f32 0.03125, %v1118_v11 }
 0xc75   :  { %v1121_v52 = vpop.xlane.xlu0 %1120 }
 0xc76   :  { %v1124_v13 = vsub.f32 %v3380_v5, %v1122_v12  ;;  %v1123_v15 = vmul.f32 0.03125, %v1121_v52 }
 0xc78   :  { %v1125_v16 = vsub.f32 %v3383_v8, %v1123_v15  ;;  %v1126_v53 = vmul.f32 %v1124_v13, %v1124_v13 }
 0xc7a   :  { %v1128_v17 = vsel %vm226_vm1, %v1126_v53, 0.0  ;;  %v1127_v18 = vmul.f32 %v1125_v16, %v1125_v16 }
 0xc7b   :  { %1129 = vadd.xlane.f32.xlu0 %v1128_v17 }
 0xc7c   :  { %v1131_v19 = vsel %vm230_vm2, %v1127_v18, 0.0 }
 0xc7f   :  { %1132 = vadd.xlane.f32.xlu0 %v1131_v19 }
 0xd08   :  { %v1130_v26 = vpop.xlane.xlu0 %1129 }
 0xd09   :  { %v1134_v28 = vmul.f32 0.03125, %v1130_v26 }
 0xd0b   :  { %v1136_v29 = vadd.f32 1e-06, %v1134_v28 }
 0xd0c   :  { %v1133_v30 = vpop.xlane.xlu0 %1132 }
 0xd0d   :  { %2888 = vrsqrt.f32 %v1136_v29  ;;  %v1135_v14 = vmul.f32 0.03125, %v1133_v30 }
 0xd0f   :  { %v1137_v32 = vadd.f32 1e-06, %v1135_v14 }
 0xd11   :  { %2890 = vrsqrt.f32 %v1137_v32 }
 0xd17   :  { %v2889_v33 = vpop.eup %2888 }
 0xd18   :  { %v1140_v34 = vmul.f32 %v2889_v33, %v1124_v13 }
 0xd1a   :  { %v1148_v39 = vmul.f32 %v2432_v36, %v1140_v34 }
 0xd1b   :  { %v2891_v37 = vpop.eup %2890 }
 0xd1c   :  { %v1141_v40 = vmul.f32 %v2891_v37, %v1125_v16  ;;  %v1156_v43 = vadd.f32 %v2433_v41, %v1148_v39 }
 0xd1e   :  { %v1149_v42 = vmul.f32 %v2432_v36, %v1141_v40 }
 0xd20   :  { %v1157_v44 = vadd.f32 %v2433_v41, %v1149_v42 }
 0xd22   :  { %v1158_v45 = vpack.c.bf16 %v1157_v44, %v1156_v43 }
 0xd24   :  { %2443 = vmatmul.mubr.msk.bf16.vlgmr.msra.gmra.mrb[28].mxu1 %vm226_vm1, %v1158_v45 }
 0xd25   :  { %2678 = vmatprep.mubr.msk.bf16.mxu1 %vm2960_vm3, %v2959_v60 }
 0xdf7   :  { %v1234_v48 = vpop.f32.mrb[28].mxu1 }
 0xdf8   :  { %v1236_v50 = vpop.f32.mrb[29].mxu1  ;;  %v1235_v35 = vadd.f32 %v1234_v48, %v1170_v47 }
 0xdf9   :  { %v1238_v51 = vpop.f32.mrb[30].mxu1  ;;  %v1237_v55 = vadd.f32 %v1236_v50, %v1174_v49 }
 0xdfa   :  { %v1239_v38 = vadd.f32 %v1238_v51, %v1170_v47  ;;  %v1240_v54 = vpop.f32.mrb[31].mxu1 }
 0xdfb   :  { %v1241_v56 = vadd.f32 %v1240_v54, %v1174_v49 }
 0xdfc   :  { %v3420_v22 = vpack.c.bf16 %v1239_v38, %v1235_v35 }
 0xdfd   :  { %v3422_v57 = vpack.c.bf16 %v1241_v56, %v1237_v55 }
 0xdfe   :  { %1320 = vrot.lane.b32.xlu1 %v3420_v22, %s2961_s27  ;;  %1246 = vrot.lane.b32.xlu0 %v3420_v22, %s2962_s3  ;;  %s3734_s27 = smov 72  }
 0xe02   :  { %1318 = vrot.lane.b32.xlu0 %v3420_v22, %s2963_s28  ;;  %s3735_s28 = smov 64  }
 0xe70   :  { %v1247_v58 = vpop.permute.xlu0 %1246  ;;  %v1321_v61 = vpop.permute.xlu1 %1320 }
 0xe71   :  { %v1252_v59 = vsel %vm359_vm5, %v1247_v58, 0  ;;  %v1326_v25 = vsel %vm359_vm5, %v1321_v61, 0 }
 0xe72   :  { %2677 = vmatpush3.bf16.xpose.msra.mxu1 %v1252_v59 }
 0xe73   :  { %2682 = vmatprep.subr.bf16.mxu1 %v2959_v60 }
 0xe74   :  { %v1319_v62 = vpop.permute.xlu0 %1318 }
 0xe79   :  { %2679 = vmatmul.mubr.msk.bf16.vlgmr.msra.gmra.mrb[32].mxu1 %vm359_vm5, %v3420_v22 }
 0xe7a   :  { %2683 = vmatpush3.bf16.xpose.msra.mxu1 %v1326_v25  ;;  %2684 = vmatprep.mubr.msk.bf16.mxu1 %vm2960_vm3, %v2959_v60 }
 0xe7b   :  { %2688 = vmatprep.subr.bf16.mxu1 %v2959_v60 }
 0xe81   :  { %2685 = vmatmul.mubr.msk.bf16.vlgmr.msra.gmra.mrb[36].mxu1 %vm359_vm5, %v1319_v62 }
 0xe82   :  { %2690 = vmatprep.mubr.msk.bf16.mxu1 %vm2960_vm3, %v2959_v60 }
 0xf4c   :  { %v1288_v0 = vpop.f32.mrb[32].mxu1 }
 0xf4d   :  { %v2680_v3 = vpop.f32.mrb[33].mxu1  ;;  %v1289_v30 = vadd.f32 %v1288_v0, %v3228_v27 }
 0xf4e   :  { %v1291_v4 = vpop.f32.mrb[34].mxu1 }
 0xf4f   :  { %v2681_v6 = vpop.f32.mrb[35].mxu1  ;;  %v1292_v16 = vadd.f32 %v1291_v4, %v3234_v31  ;;  %v1295_v14 = vsel %vm407_vm6, %v1289_v30, -inf }
 0xf51   :  { %v1298_v53 = vsel %vm411_vm7, %v1292_v16, -inf }
 0xf54   :  { %v1362_v7 = vpop.f32.mrb[36].mxu1 }
 0xf55   :  { %v1363_v9 = vadd.f32 %v1362_v7, %v3228_v27  ;;  %v2686_v10 = vpop.f32.mrb[37].mxu1 }
 0xf56   :  { %v1365_v11 = vpop.f32.mrb[38].mxu1 }
 0xf57   :  { %v1366_v12 = vadd.f32 %v1365_v11, %v3234_v31  ;;  %v2687_v52 = vpop.f32.mrb[39].mxu1  ;;  %v1369_v13 = vsel %vm407_vm6, %v1363_v9, -inf }
 0xf58   :  { %1370 = vmax.xlane.f32.xlu0 %v1369_v13 }
 0xf59   :  { %v1372_v15 = vsel %vm411_vm7, %v1366_v12, -inf }
 0xf5a   :  { %1373 = vmax.xlane.f32.xlu1 %v1372_v15 }
 0xf6b   :  { %1492 = vrot.lane.b32.xlu1 %v3420_v22, %s2965_s29 }
 0xf6f   :  { %1613 = vrot.lane.b32.xlu1 %v3420_v22, %s3731_s7 }
 0xf93   :  { %1299 = vmax.xlane.f32.xlu1 %v1298_v53 }
 0xfe5   :  { %v1371_v17 = vpop.xlane.xlu0 %1370 }
 0xfe6   :  { %v1375_v18 = vsub.f32 %v1363_v9, %v1371_v17 }
 0xfe7   :  { %v1374_v19 = vpop.xlane.xlu1 %1373 }
 0xfe8   :  { %v1377_v20 = vmul.f32 1.442695, %v1375_v18  ;;  %v1376_v21 = vsub.f32 %v1366_v12, %v1374_v19 }
 0xfea   :  { %2892 = vpow2.f32 %v1377_v20  ;;  %v1379_v23 = vmul.f32 1.442695, %v1376_v21 }
 0xfeb   :  { %v1493_v42 = vpop.permute.xlu1 %1492 }
 0xfec   :  { %2894 = vpow2.f32 %v1379_v23  ;;  %v1498_v45 = vsel %vm359_vm5, %v1493_v42, 0 }
 0xfef   :  { %v1614_v48 = vpop.permute.xlu1 %1613 }
 0xff4   :  { %v2893_v24 = vpop.eup %2892 }
 0xff5   :  { %v1381_v26 = vsel %vm407_vm6, %v2893_v24, 0.0 }
 0xff6   :  { %v2895_v28 = vpop.eup %2894  ;;  %1382 = vadd.xlane.f32.xlu0 %v1381_v26 }
 0xff7   :  { %v1384_v29 = vsel %vm411_vm7, %v2895_v28, 0.0 }
 0xffa   :  { %1385 = vadd.xlane.f32.xlu0 %v1384_v29 }
0x1010   :  { %1392 = vrot.lane.b32.xlu0 %v3420_v22, %s3732_s5 }
0x1014   :  { %1490 = vrot.lane.b32.xlu0 %v3420_v22, %s3733_s6 }
0x1018   :  { %1615 = vrot.lane.b32.xlu0 %v3420_v22, %s3734_s27 }
0x1020   :  { %v1300_v51 = vpop.xlane.xlu1 %1299 }
0x1021   :  { %v1302_v56 = vsub.f32 %v1292_v16, %v1300_v51 }
0x1023   :  { %v1305_v59 = vmul.f32 1.442695, %v1302_v56 }
0x1037   :  { %1296 = vmax.xlane.f32.xlu0 %v1295_v14 }
0x1083   :  { %v1383_v32 = vpop.xlane.xlu0 %1382 }
0x1084   :  { %2896 = vrcp.f32 %v1383_v32 }
0x1087   :  { %v1386_v33 = vpop.xlane.xlu0 %1385 }
0x1088   :  { %2898 = vrcp.f32 %v1386_v33 }
0x108b   :  { %v1393_v34 = vpop.permute.xlu0 %1392 }
0x108c   :  { %v1398_v36 = vsel %vm511_vm4, %v1393_v34, 0 }
0x108d   :  { %2689 = vmatpush3.bf16.msra.mxu1 %v1398_v36 }
0x108e   :  { %2700 = vmatprep.subr.bf16.mxu1 %v2959_v60  ;;  %v2897_v37 = vpop.eup %2896 }
0x108f   :  { %v1389_v40 = vmul.f32 %v2897_v37, %v2893_v24  ;;  %v1491_v44 = vpop.permute.xlu0 %1490 }
0x1092   :  { %v2899_v39 = vpop.eup %2898 }
0x1093   :  { %v1390_v41 = vmul.f32 %v2899_v39, %v2895_v28  ;;  %v1616_v46 = vpop.permute.xlu0 %1615 }
0x1094   :  { %v1621_v47 = vsel %vm359_vm5, %v1616_v46, 0 }
0x1095   :  { %v1391_v43 = vpack.c.bf16 %v1390_v41, %v1389_v40 }
0x1097   :  { %2691 = vmatmul.mubr.msk.bf16.vlgmr.msra.gmra.mrb[40].mxu1 %vm407_vm6, %v1391_v43 }
0x1098   :  { %2701 = vmatpush3.bf16.xpose.msra.mxu1 %v1498_v45  ;;  %2702 = vmatprep.mubr.msk.bf16.mxu1 %vm2960_vm3, %v2959_v60 }
0x1099   :  { %2712 = vmatprep.subr.bf16.mxu1 %v2959_v60 }
0x109f   :  { %2703 = vmatmul.mubr.msk.bf16.vlgmr.msra.gmra.mrb[44].mxu1 %vm359_vm5, %v1491_v44 }
0x10a0   :  { %2713 = vmatpush3.bf16.xpose.msra.mxu1 %v1621_v47  ;;  %2714 = vmatprep.mubr.msk.bf16.mxu1 %vm2960_vm3, %v2959_v60 }
0x10a1   :  { %2724 = vmatprep.subr.bf16.mxu1 %v2959_v60 }
0x10a7   :  { %2715 = vmatmul.mubr.msk.bf16.vlgmr.msra.gmra.mrb[48].mxu1 %vm359_vm5, %v1614_v48 }
0x10a8   :  { %2728 = vmatprep.mubr.msk.bf16.mxu1 %vm2960_vm3, %v2959_v60 }
0x10c4   :  { %v1297_v49 = vpop.xlane.xlu0 %1296 }
0x10c5   :  { %v1301_v38 = vsub.f32 %v1289_v30, %v1297_v49 }
0x10c7   :  { %v1303_v58 = vmul.f32 1.442695, %v1301_v38 }
0x10c9   :  { %2900 = vpow2.f32 %v1303_v58 }
0x10ca   :  { %2902 = vpow2.f32 %v1305_v59  ;;  %v1568_v59 = vsel %vm511_vm4, %v3422_v57, 0 }
0x10d3   :  { %v2901_v16 = vpop.eup %2900 }
0x10d4   :  { %v2903_v17 = vpop.eup %2902  ;;  %v1307_v18 = vsel %vm407_vm6, %v2901_v16, 0.0 }
0x10d5   :  { %v1310_v19 = vsel %vm411_vm7, %v2903_v17, 0.0 }
0x116a   :  { %v3476_v50 = vpop.f32.mrb[40].mxu1 }
0x116b   :  { %v2692_v35 = vpop.f32.mrb[41].mxu1 }
0x116c   :  { %v3478_v54 = vpop.f32.mrb[42].mxu1 }
0x116d   :  { %v2693_v55 = vpop.f32.mrb[43].mxu1 }
0x1172   :  { %v1534_v61 = vpop.f32.mrb[44].mxu1 }
0x1173   :  { %v1535_v25 = vadd.f32 %v1534_v61, %v3228_v27  ;;  %v2704_v62 = vpop.f32.mrb[45].mxu1 }
0x1174   :  { %v1537_v0 = vpop.f32.mrb[46].mxu1 }
0x1175   :  { %v1538_v3 = vadd.f32 %v1537_v0, %v3234_v31  ;;  %v2705_v4 = vpop.f32.mrb[47].mxu1  ;;  %v1541_v6 = vsel %vm407_vm6, %v1535_v25, -inf }
0x1176   :  { %1542 = vmax.xlane.f32.xlu0 %v1541_v6 }
0x1177   :  { %v1544_v7 = vsel %vm411_vm7, %v1538_v3, -inf }
0x117a   :  { %1545 = vmax.xlane.f32.xlu0 %v1544_v7  ;;  %v1657_v9 = vpop.f32.mrb[48].mxu1 }
0x117b   :  { %v1658_v10 = vadd.f32 %v1657_v9, %v3228_v27  ;;  %v2716_v11 = vpop.f32.mrb[49].mxu1 }
0x117c   :  { %v1660_v12 = vpop.f32.mrb[50].mxu1 }
0x117d   :  { %v1661_v52 = vadd.f32 %v1660_v12, %v3234_v31  ;;  %v2717_v13 = vpop.f32.mrb[51].mxu1  ;;  %v1664_v15 = vsel %vm407_vm6, %v1658_v10, -inf }
0x117e   :  { %1665 = vmax.xlane.f32.xlu1 %v1664_v15 }
0x117f   :  { %v1667_v53 = vsel %vm411_vm7, %v1661_v52, -inf }
0x1180   :  { %1668 = vmax.xlane.f32.xlu0 %v1667_v53 }
0x1182   :  { %1308 = vadd.xlane.f32.xlu1 %v1307_v18 }
0x1184   :  { %1311 = vadd.xlane.f32.xlu0 %v1310_v19 }
0x1203   :  { %v1543_v27 = vpop.xlane.xlu0 %1542 }
0x1204   :  { %v1547_v20 = vsub.f32 %v1535_v25, %v1543_v27 }
0x1206   :  { %v1549_v21 = vmul.f32 1.442695, %v1547_v20 }
0x1207   :  { %v1546_v23 = vpop.xlane.xlu0 %1545 }
0x1208   :  { %2904 = vpow2.f32 %v1549_v21  ;;  %v1548_v31 = vsub.f32 %v1538_v3, %v1546_v23 }
0x120a   :  { %v1551_v24 = vmul.f32 1.442695, %v1548_v31 }
0x120b   :  { %v1666_v26 = vpop.xlane.xlu1 %1665 }
0x120c   :  { %2906 = vpow2.f32 %v1551_v24  ;;  %v1670_v28 = vsub.f32 %v1658_v10, %v1666_v26  ;;  %v2453_v24 = vld [vmem:[%s3690_s8 + $0x1] ss:$0 sm:$0xff] }
0x120d   :  { %v1669_v29 = vpop.xlane.xlu0 %1668 }
0x120e   :  { %v1672_v30 = vmul.f32 1.442695, %v1670_v28  ;;  %v1671_v14 = vsub.f32 %v1661_v52, %v1669_v29 }
0x120f   :  { %v1309_v44 = vpop.xlane.xlu1 %1308 }
0x1210   :  { %2908 = vpow2.f32 %v1672_v30  ;;  %v1674_v32 = vmul.f32 1.442695, %v1671_v14 }
0x1211   :  { %v1312_v43 = vpop.xlane.xlu0 %1311 }
0x1212   :  { %v2905_v33 = vpop.eup %2904  ;;  %2910 = vpow2.f32 %v1674_v32 }
0x1213   :  { %v1553_v34 = vsel %vm407_vm6, %v2905_v33, 0.0  ;;  %2912 = vrcp.f32 %v1312_v43 }
0x1214   :  { %1554 = vadd.xlane.f32.xlu1 %v1553_v34  ;;  %2914 = vrcp.f32 %v1309_v44  ;;  %v2812_v44 = vld [vmem:[%s3693_s11 + $0x10] sm:$0xff]  }
0x1215   :  { %2725 = vmatpush3.bf16.msra.mxu1 %v2812_v44 }
0x1216   :  { %v2907_v36 = vpop.eup %2906  ;;  %2726 = vmatprep.subr.bf16.mxu1 %v2959_v60 }
0x1217   :  { %v1556_v37 = vsel %vm411_vm7, %v2907_v36, 0.0 }
0x1218   :  { %1557 = vadd.xlane.f32.xlu0 %v1556_v37 }
0x121a   :  { %v2909_v39 = vpop.eup %2908 }
0x121b   :  { %v1676_v40 = vsel %vm407_vm6, %v2909_v39, 0.0 }
0x121c   :  { %v2911_v41 = vpop.eup %2910  ;;  %1677 = vadd.xlane.f32.xlu1 %v1676_v40 }
0x121d   :  { %v1679_v42 = vsel %vm411_vm7, %v2911_v41, 0.0  ;;  %v2913_v47 = vpop.eup %2912 }
0x121e   :  { %1680 = vadd.xlane.f32.xlu0 %v1679_v42  ;;  %v2915_v49 = vpop.eup %2914  ;;  %v1316_v51 = vmul.f32 %v2913_v47, %v2903_v17 }
0x121f   :  { %v1315_v55 = vmul.f32 %v2915_v49, %v2901_v16 }
0x1221   :  { %v1317_v56 = vpack.c.bf16 %v1316_v51, %v1315_v55  ;;  %v2456_v55 = vld [vmem:[%s3691_s9 + $0x1] ss:$0 sm:$0xff] }
0x122d   :  { %1441 = vrot.lane.b32.xlu1 %v3420_v22, %s3735_s28 }
0x1234   :  { %1688 = vrot.lane.b32.xlu0 %v3422_v57, %s2962_s3 }
0x12a1   :  { %v1555_v45 = vpop.xlane.xlu1 %1554 }
0x12a5   :  { %v1558_v46 = vpop.xlane.xlu0 %1557 }
0x12a6   :  { %2916 = vrcp.f32 %v1558_v46 }
0x12a7   :  { %2918 = vrcp.f32 %v1555_v45  ;;  %v2813_v45 = vld [vmem:[%s3693_s11 + $0x18] sm:$0xff]  }
0x12a8   :  { %2727 = vmatpush3.bf16.msra.mxu1 %v2813_v45 }
0x12a9   :  { %v1678_v48 = vpop.xlane.xlu1 %1677 }
0x12ab   :  { %v1681_v35 = vpop.xlane.xlu0 %1680 }
0x12ac   :  { %2920 = vrcp.f32 %v1681_v35 }
0x12ad   :  { %v1442_v38 = vpop.permute.xlu1 %1441  ;;  %2922 = vrcp.f32 %v1678_v48 }
0x12ae   :  { %v1447_v22 = vsel %vm511_vm4, %v1442_v38, 0 }
0x12af   :  { %2695 = vmatpush3.bf16.msra.mxu0 %v1447_v22  ;;  %v1689_v0 = vpop.permute.xlu0 %1688 }
0x12b0   :  { %2706 = vmatprep.subr.bf16.mxu0 %v2959_v60  ;;  %v2917_v58 = vpop.eup %2916  ;;  %v1694_v6 = vsel %vm511_vm4, %v1689_v0, 0 }
0x12b1   :  { %v2919_v61 = vpop.eup %2918  ;;  %v1562_v25 = vmul.f32 %v2917_v58, %v2907_v36 }
0x12b2   :  { %2697 = vmatmul.mubr.msk.bf16.vlgmr.msra.gmra.mrb[20].mxu0 %vm407_vm6, %v1317_v56  ;;  %v1561_v62 = vmul.f32 %v2919_v61, %v2905_v33  ;;  %v2457_v61 = vld [vmem:[%s3692_s10 + $0x1] ss:$0 sm:$0xff] }
0x12b3   :  { %2707 = vmatpush3.bf16.msra.mxu0 %v1568_v59  ;;  %2708 = vmatprep.mubr.msk.bf16.mxu0 %vm2960_vm3, %v2959_v60 }
0x12b4   :  { %2718 = vmatprep.subr.bf16.mxu0 %v2959_v60  ;;  %v1563_v3 = vpack.c.bf16 %v1562_v25, %v1561_v62 }
0x12b6   :  { %v2921_v4 = vpop.eup %2920 }
0x12b7   :  { %v2923_v7 = vpop.eup %2922  ;;  %v1685_v57 = vmul.f32 %v2921_v4, %v2911_v41  ;;  %v2814_v4 = vld [vmem:[%s3695_s13 + $0x40] sm:$0xff]  }
0x12b8   :  { %v1684_v9 = vmul.f32 %v2923_v7, %v2909_v39  ;;  %v2816_v7 = vld [vmem:[%s3695_s13 + $0x50] sm:$0xff]  }
0x12ba   :  { %2709 = vmatmul.mubr.msk.bf16.vlgmr.msra.gmra.mrb[24].mxu0 %vm407_vm6, %v1563_v3  ;;  %v1686_v10 = vpack.c.bf16 %v1685_v57, %v1684_v9  ;;  %v2817_v57 = vld [vmem:[%s3695_s13 + $0x58] sm:$0xff]   ;;  %v2818_v9 = vld [vmem:[%s3695_s13 + $0x60] sm:$0xff]  }
0x12bb   :  { %2719 = vmatpush3.bf16.msra.mxu0 %v1694_v6  ;;  %2720 = vmatprep.mubr.msk.bf16.mxu0 %vm2960_vm3, %v2959_v60  ;;  %v2815_v6 = vld [vmem:[%s3695_s13 + $0x48] sm:$0xff]  }
0x12bc   :  { %2732 = vmatprep.subr.bf16.mxu0 %v2959_v60 }
0x12c2   :  { %2721 = vmatmul.mubr.msk.bf16.vlgmr.msra.gmra.mrb[28].mxu0 %vm407_vm6, %v1686_v10  ;;  %v2819_v10 = vld [vmem:[%s3695_s13 + $0x68] sm:$0xff]  }
0x12c3   :  { %2748 = vmatprep.mubr.msk.bf16.mxu0 %vm2960_vm3, %v2959_v60  ;;  %2733 = vmatpush3.bf16.msra.mxu0 %v2814_v4 }
0x12c4   :  { %2734 = vmatprep.subr.bf16.mxu0 %v2959_v60 }
0x12c7   :  { %2735 = vmatpush3.bf16.msra.mxu0 %v2815_v6  ;;  %v2495_v6 = vld [vmem:[%s3698_s16] ss:$0 sm:$0xff] }
0x12c8   :  { %2736 = vmatprep.subr.bf16.mxu0 %v2959_v60 }
0x12cb   :  { %2737 = vmatpush3.bf16.msra.mxu0 %v2816_v7 }
0x12cc   :  { %2738 = vmatprep.subr.bf16.mxu0 %v2959_v60 }
0x12cf   :  { %2739 = vmatpush3.bf16.msra.mxu0 %v2817_v57  ;;  %v2496_v57 = vld [vmem:[%s3699_s17] ss:$0 sm:$0xff]  ;;  %s2378_s17 = sshll.u32 %s2972_s23, 4  ;;  %s2379_s17 = int_to_ptr.vmem [resolvable:$true] %s2378_s17 }
0x12d0   :  { %2740 = vmatprep.subr.bf16.mxu0 %v2959_v60  ;;  %s2934_s24 = scalar_lea.vmem %s2379_s17, 32  ;;  %p2939_p1 = scmp.lt.s32.totalorder %s2379_s17, %s2379_s17 }
0x12d1   :  { %p2935_p0 = scmp.ne.s32.totalorder %s2379_s17, %s2934_s24  ;;  %p2940_p2 = scmp.lt.s32.totalorder %s2934_s24, %s2934_s24 }
0x12d3   :  { %2741 = vmatpush3.bf16.msra.mxu0 %v2818_v9  ;;  %p2941_p3 = por %p2940_p2, %p2939_p1 }
0x12d4   :  { %2742 = vmatprep.subr.bf16.mxu0 %v2959_v60 }
0x12d5   :  { %p2942_p4 = pnand %p2941_p3, %p2935_p0 }
0x12d7   :  { %2743 = vmatpush3.bf16.msra.mxu0 %v2819_v10 }
0x12d8   :  { %2744 = vmatprep.subr.bf16.mxu0 %v2959_v60 }
0x1385   :  { %v1483_v11 = vpop.f32.mrb[20].mxu0 }
0x1386   :  { %v1484_v12 = vadd.f32 %v1483_v11, %v3476_v50  ;;  %v2698_v52 = vpop.f32.mrb[21].mxu0  ;;  %v2820_v11 = vld [vmem:[%s3695_s13 + $0x70] sm:$0xff]  }
0x1387   :  { %v1486_v13 = vpop.f32.mrb[22].mxu0  ;;  %2745 = vmatpush3.bf16.msra.mxu0 %v2820_v11  ;;  %v2463_v52 = vld [vmem:[%s3694_s12 + $0x1] ss:$0 sm:$0xff] }
0x1388   :  { %v1487_v15 = vadd.f32 %v1486_v13, %v3478_v54  ;;  %v2699_v16 = vpop.f32.mrb[23].mxu0  ;;  %2746 = vmatprep.subr.bf16.mxu0 %v2959_v60  ;;  %v2829_v11 = vld [vmem:[%s3702_s20] sm:$0xff]  }
0x138d   :  { %v1604_v53 = vpop.f32.mrb[24].mxu0 }
0x138e   :  { %v1611_v17 = vadd.f32 %v1604_v53, %v1484_v12  ;;  %v2710_v18 = vpop.f32.mrb[25].mxu0  ;;  %v2821_v12 = vld [vmem:[%s3695_s13 + $0x78] sm:$0xff]  }
0x138f   :  { %v1607_v19 = vpop.f32.mrb[26].mxu0  ;;  %2747 = vmatpush3.bf16.msra.mxu0 %v2821_v12 }
0x1390   :  { %v1612_v27 = vadd.f32 %v1607_v19, %v1487_v15  ;;  %v2711_v20 = vpop.f32.mrb[27].mxu0 }
0x1395   :  { %v1730_v21 = vpop.f32.mrb[28].mxu0 }
0x1396   :  { %v1737_v23 = vadd.f32 %v1730_v21, %v1611_v17  ;;  %v2722_v31 = vpop.f32.mrb[29].mxu0 }
0x1397   :  { %v1733_v26 = vpop.f32.mrb[30].mxu0 }
0x1398   :  { %v1739_v50 = vadd.f32 %v1737_v23, %v3380_v5  ;;  %v1738_v28 = vadd.f32 %v1733_v26, %v1612_v27  ;;  %v2723_v29 = vpop.f32.mrb[31].mxu0 }
0x139a   :  { %v3520_v54 = vadd.f32 %v2453_v24, %v1739_v50  ;;  %v1740_v30 = vadd.f32 %v1738_v28, %v3383_v8 }
0x139c   :  { %v3523_v14 = vadd.f32 %v2453_v24, %v1740_v30  ;;  %v1755_v32 = vsel %vm226_vm1, %v3520_v54, 0.0 }
0x139d   :  { %1756 = vadd.xlane.f32.xlu1 %v1755_v32 }
0x139e   :  { %v1758_v33 = vsel %vm230_vm2, %v3523_v14, 0.0 }
0x139f   :  { %1759 = vadd.xlane.f32.xlu0 %v1758_v33 }
0x142a   :  { %v1757_v34 = vpop.xlane.xlu1 %1756 }
0x142b   :  { %v1761_v36 = vmul.f32 0.03125, %v1757_v34 }
0x142c   :  { %v1760_v37 = vpop.xlane.xlu0 %1759 }
0x142d   :  { %v1763_v5 = vsub.f32 %v3520_v54, %v1761_v36  ;;  %v1762_v39 = vmul.f32 0.03125, %v1760_v37 }
0x142f   :  { %v1764_v40 = vsub.f32 %v3523_v14, %v1762_v39  ;;  %v1765_v41 = vmul.f32 %v1763_v5, %v1763_v5  ;;  %v2970_v39 = vmov 0.0|0.0  }
0x1430   :  { %2759 = vmatprep.subr.bf16.mxu1 %v2970_v39 }
0x1431   :  { %v1767_v8 = vsel %vm226_vm1, %v1765_v41, 0.0  ;;  %v1766_v42 = vmul.f32 %v1764_v40, %v1764_v40 }
0x1432   :  { %1768 = vadd.xlane.f32.xlu1 %v1767_v8 }
0x1433   :  { %v1770_v43 = vsel %vm230_vm2, %v1766_v42, 0.0  ;;  %v2492_v42 = vld [vmem:[%s3696_s14 + $0x1] ss:$0 sm:$0xff] }
0x1434   :  { %1771 = vadd.xlane.f32.xlu0 %v1770_v43 }
0x14bf   :  { %v1769_v46 = vpop.xlane.xlu1 %1768 }
0x14c0   :  { %v1773_v47 = vmul.f32 0.03125, %v1769_v46 }
0x14c1   :  { %v1772_v48 = vpop.xlane.xlu0 %1771 }
0x14c2   :  { %v1775_v49 = vadd.f32 1e-06, %v1773_v47  ;;  %v1774_v51 = vmul.f32 0.03125, %v1772_v48 }
0x14c4   :  { %2924 = vrsqrt.f32 %v1775_v49  ;;  %v1776_v35 = vadd.f32 1e-06, %v1774_v51 }
0x14c6   :  { %2926 = vrsqrt.f32 %v1776_v35 }
0x14ce   :  { %v2925_v38 = vpop.eup %2924 }
0x14cf   :  { %v1779_v22 = vmul.f32 %v2925_v38, %v1763_v5 }
0x14d0   :  { %v2927_v56 = vpop.eup %2926 }
0x14d1   :  { %v1787_v58 = vmul.f32 %v2456_v55, %v1779_v22  ;;  %v1780_v59 = vmul.f32 %v2927_v56, %v1764_v40 }
0x14d3   :  { %v1788_v25 = vmul.f32 %v2456_v55, %v1780_v59  ;;  %v1795_v62 = vadd.f32 %v2457_v61, %v1787_v58  ;;  %v2824_v58 = vld [vmem:[%s3700_s18 + $0x4] ss:$8 sps:$4 sm:$0xff]   ;;  %v2825_v59 = vld [vmem:[%s3700_s18 + $0x10] ss:$8 sps:$4 sm:$0xff]  }
0x14d5   :  { %v1796_v0 = vadd.f32 %v2457_v61, %v1788_v25  ;;  %v2827_v61 = vld [vmem:[%s3700_s18 + $0x14] ss:$8 sps:$4 sm:$0xff]   ;;  %v2828_v25 = vld [vmem:[%s3702_s20 + $0x40] sm:$0xff]  }
0x14d7   :  { %v1797_v3 = vpack.c.bf16 %v1796_v0, %v1795_v62 }
0x14d9   :  { %2729 = vmatmul.mubr.msk.bf16.vlgmr.msra.gmra.mrb[52].mxu1 %vm226_vm1, %v1797_v3 }
0x14da   :  { %2756 = vmatprep.mubr.msk.f32.mxu1 %vm2960_vm3, %v2959_v60 }
0x15ac   :  { %v1860_v13 = vpop.f32.mrb[52].mxu1 }
0x15ad   :  { %v1861_v15 = vadd.f32 %v2463_v52, %v1860_v13  ;;  %v2730_v16 = vpop.f32.mrb[53].mxu1  ;;  %v2831_v13 = vld [vmem:[%s3702_s20 + $0x8] sm:$0xff]  }
0x15ae   :  { %v1863_v53 = vpop.f32.mrb[54].mxu1  ;;  %v2833_v16 = vld [vmem:[%s3702_s20 + $0x10] sm:$0xff]  }
0x15af   :  { %v1867_v17 = vmul.f32 %v1861_v15, %v1861_v15  ;;  %v1864_v18 = vadd.f32 %v2463_v52, %v1863_v53  ;;  %v2731_v19 = vpop.f32.mrb[55].mxu1  ;;  %v2830_v52 = vld [vmem:[%s3702_s20 + $0x48] sm:$0xff]   ;;  %v2834_v53 = vld [vmem:[%s3702_s20 + $0x58] sm:$0xff]  }
0x15b0   :  { %v2837_v19 = vld [vmem:[%s3702_s20 + $0x20] sm:$0xff]  }
0x15b1   :  { %v1869_v27 = vmul.f32 %v1867_v17, %v1861_v15  ;;  %v1868_v20 = vmul.f32 %v1864_v18, %v1864_v18  ;;  %v2835_v17 = vld [vmem:[%s3702_s20 + $0x18] sm:$0xff]  }
0x15b3   :  { %v1871_v21 = vmul.f32 0.044715, %v1869_v27  ;;  %v1870_v60 = vmul.f32 %v1868_v20, %v1864_v18  ;;  %v2838_v27 = vld [vmem:[%s3702_s20 + $0x68] sm:$0xff]  }
0x15b4   :  { %v2839_v20 = vld [vmem:[%s3702_s20 + $0x28] sm:$0xff]  }
0x15b5   :  { %v1873_v23 = vadd.f32 %v1871_v21, %v1861_v15  ;;  %v1872_v31 = vmul.f32 0.044715, %v1870_v60  ;;  %v2840_v21 = vld [vmem:[%s3702_s20 + $0x70] sm:$0xff]  }
0x15b6   :  { %v2841_v60 = vld [vmem:[%s3702_s20 + $0x30] sm:$0xff]  }
0x15b7   :  { %v1875_v24 = vmul.f32 0.7978846, %v1873_v23  ;;  %v1874_v26 = vadd.f32 %v1872_v31, %v1864_v18  ;;  %v2842_v23 = vld [vmem:[%s3702_s20 + $0x78] sm:$0xff]  }
0x15b8   :  { %v2843_v31 = vld [vmem:[%s3702_s20 + $0x38] sm:$0xff]  }
0x15b9   :  { %2928 = vtanh.f32 %v1875_v24  ;;  %v1876_v50 = vmul.f32 0.7978846, %v1874_v26  ;;  %v2116_v24 = vld [vmem:[%s3701_s19] sm:$0x3] }
0x15ba   :  { %v2121_v26 = vrot.slane %v2116_v24, %v3188_v63  ;;  %v2502_v63 = vld [vmem:[%s3703_s21] ss:$0 sm:$0xff] }
0x15bb   :  { %2930 = vtanh.f32 %v1876_v50  ;;  %v2125_v50 = vrot.slane %v2116_v24, %v3193_v2 }
0x15c3   :  { %v2929_v28 = vpop.eup %2928 }
0x15c4   :  { %v1879_v29 = vadd.f32 1.0, %v2929_v28 }
0x15c5   :  { %v2931_v30 = vpop.eup %2930 }
0x15c6   :  { %v1881_v32 = vmul.f32 0.5, %v1879_v29  ;;  %v1880_v33 = vadd.f32 1.0, %v2931_v30 }
0x15c8   :  { %v1882_v34 = vmul.f32 0.5, %v1880_v33  ;;  %v1883_v36 = vmul.f32 %v1881_v32, %v1861_v15  ;;  %v2832_v15 = vld [vmem:[%s3702_s20 + $0x50] sm:$0xff]  }
0x15ca   :  { %v1884_v37 = vmul.f32 %v1882_v34, %v1864_v18  ;;  %v2836_v18 = vld [vmem:[%s3702_s20 + $0x60] sm:$0xff]  }
0x15cc   :  { %v1885_v5 = vpack.c.bf16 %v1884_v37, %v1883_v36 }
0x15ce   :  { %2749 = vmatmul.mubr.bf16.vlgmr.msra.gmra.mrb[32].mxu0 %v1885_v5 }
0x16a1   :  { %v1985_v40 = vpop.f32.mrb[32].mxu0 }
0x16a2   :  { %v1992_v41 = vadd.f32 %v1985_v40, %v3520_v54  ;;  %v2750_v8 = vpop.f32.mrb[33].mxu0  ;;  %v2004_v54 = vld [vmem:[%s3697_s15] sm:$0x3] }
0x16a3   :  { %v1988_v43 = vpop.f32.mrb[34].mxu0 }
0x16a4   :  { %v1993_v44 = vadd.f32 %v1988_v43, %v3523_v14  ;;  %v2751_v45 = vpop.f32.mrb[35].mxu0  ;;  %v2002_v46 = vadd.f32 %v2492_v42, %v1992_v41 }
0x16a6   :  { %v2003_v47 = vadd.f32 %v2492_v42, %v1993_v44 }
0x16a8   :  { %v2760_v48 = vpack.c.bf16 %v2003_v47, %v2002_v46 }
0x16aa   :  { %2762 = vmatpush3.bf16.msk.msra.mxu1 %vm2761_vm10, %v2760_v48 }
0x16ab   :  { %2151 = vmatprep.subr.bf16.mxu1 %v2824_v58 }
0x16ad   :  { %2757 = vmatmul.mubr.msk.f32.vlgmr.msra.gmra.mrb[56].mxu1 %vm407_vm6, %v2004_v54 }
0x16ae   :  { %2183 = vmatprep.mubr.bf16.mxu1 %v2958_v1  ;;  %v2822_v1 = vld [vmem:[%s3700_s18] ss:$8 sps:$4 sm:$0xff]  }
0x16af   :  { %2152 = vmatpush1.bf16.msra.mxu1 %v2822_v1 }
0x16b0   :  { %2153 = vmatprep.subr.bf16.mxu1 %v2827_v61 }
0x16b3   :  { %2154 = vmatpush1.bf16.msra.mxu1 %v2825_v59 }
0x16b4   :  { %2578 = vmatprep.subr.bf16.mxu1 %v2828_v25 }
0x1780   :  { %v2078_v49 = vpop.f32.mrb[56].mxu1 }
0x1781   :  { %v2084_v51 = vsel %vm230_vm2, %v2078_v49, 0.0  ;;  %v2758_v14 = vpop.f32.mrb[57].mxu1 }
0x1782   :  { %2085 = vadd.xlane.f32.xlu1 %v2084_v51 }
0x180f   :  { %v2086_v35 = vpop.xlane.xlu1 %2085 }
0x1810   :  { %v2087_v38 = vmul.f32 0.03125, %v2086_v35 }
0x1812   :  { %v2088_v55 = vsub.f32 %v2078_v49, %v2087_v38 }
0x1814   :  { %v2089_v22 = vmul.f32 %v2088_v55, %v2088_v55 }
0x1816   :  { %v2090_v56 = vsel %vm230_vm2, %v2089_v22, 0.0 }
0x1817   :  { %2091 = vadd.xlane.f32.xlu0 %v2090_v56 }
0x18a4   :  { %v2092_v62 = vpop.xlane.xlu0 %2091 }
0x18a5   :  { %v2093_v0 = vmul.f32 0.03125, %v2092_v62 }
0x18a7   :  { %v2094_v3 = vadd.f32 1e-06, %v2093_v0 }
0x18a9   :  { %2932 = vrsqrt.f32 %v2094_v3 }
0x18b3   :  { %v2933_v4 = vpop.eup %2932 }
0x18b4   :  { %v2096_v7 = vmul.f32 %v2933_v4, %v2088_v55 }
0x18b6   :  { %v2103_v9 = vmul.f32 %v2495_v6, %v2096_v7 }
0x18b8   :  { %v2110_v10 = vadd.f32 %v2496_v57, %v2103_v9 }
0x18ba   :  { %v2111_v12 = vpack.c.bf16 %v2110_v10, %v2110_v10 }
0x18bc   :  { %2501 = vmatmul.mubr.msk.bf16.vlgmr.msra.gmra.mrb[60].mxu1 %vm226_vm1, %v2111_v12 }
0x18bd   :  { %2579 = vmatpush3.bf16.msra.mxu1 %v2829_v11 }
0x18be   :  { %2580 = vmatprep.subr.bf16.mxu1 %v2830_v52 }
0x18c1   :  { %2581 = vmatpush3.bf16.msra.mxu1 %v2831_v13 }
0x18c2   :  { %2582 = vmatprep.subr.bf16.mxu1 %v2832_v15 }
0x18c5   :  { %2583 = vmatpush3.bf16.msra.mxu1 %v2833_v16 }
0x18c6   :  { %2584 = vmatprep.subr.bf16.mxu1 %v2834_v53 }
0x18c9   :  { %2585 = vmatpush3.bf16.msra.mxu1 %v2835_v17 }
0x18ca   :  { %2586 = vmatprep.subr.bf16.mxu1 %v2836_v18 }
0x18cd   :  { %2587 = vmatpush3.bf16.msra.mxu1 %v2837_v19 }
0x18ce   :  { %2588 = vmatprep.subr.bf16.mxu1 %v2838_v27 }
0x18d1   :  { %2589 = vmatpush3.bf16.msra.mxu1 %v2839_v20 }
0x18d2   :  { %2590 = vmatprep.subr.bf16.mxu1 %v2840_v21 }
0x18d5   :  { %2591 = vmatpush3.bf16.msra.mxu1 %v2841_v60 }
0x18d6   :  { %2592 = vmatprep.subr.bf16.mxu1 %v2842_v23 }
0x18d9   :  { %2593 = vmatpush3.bf16.msra.mxu1 %v2843_v31 }
0x198f   :  { %v2185_v28 = vpop.f32.mrb[60].mxu1 }
0x1990   :  { %v2186_v29 = vadd.f32 %v2185_v28, %v2121_v26  ;;  %v2187_v30 = vpop.f32.mrb[61].mxu1 }
0x1991   :  { %v2188_v32 = vadd.f32 %v2187_v30, %v2125_v50  ;;  %v2189_v33 = vpop.f32.mrb[62].mxu1 }
0x1992   :  { %v2192_v34 = vmax.f32 %v2186_v29, 0.0  ;;  %v2190_v36 = vpop.f32.mrb[63].mxu1 }
0x1993   :  { %v2193_v37 = vmax.f32 %v2188_v32, 0.0 }
0x1994   :  { %v2194_v39 = vpack.c.bf16 %v2192_v34, %v2192_v34 }
0x1995   :  { %v2195_v5 = vpack.c.bf16 %v2193_v37, %v2193_v37 }
0x1997   :  { %2363 = vmatprep.mubr.bf16.mxu1 %v2195_v5 }
0x1998   :  { %2364 = vmatmul.mubr.bf16.vlgmr.msra.gmra.mrb[64].mxu1 %v2194_v39 }
0x1a6b   :  { %v2594_v40 = vpop.f32.mrb[64].mxu1 }
0x1a6c   :  { %v2595_v41 = vpop.f32.mrb[65].mxu1 }
0x1a6d   :  { %v2596_v2 = vadd.f32 %v2595_v41, %v2594_v40  ;;  %v2597_v8 = vpop.f32.mrb[66].mxu1 }
0x1a6e   :  { %v2598_v42 = vpop.f32.mrb[67].mxu1 }
0x1a6f   :  { %v2366_v43 = vadd.f32 %v2596_v2, %v2502_v63 }
0x1a71   :  { %2371 = vst [vmem:[#allocation2] sm:$0x3] %v2366_v43 }
0x1a72   :  { %2945 = shalt.err (!%p2942_p4)
}
0x1a73   :  { %s2946_s13 = scalar_lea.hbm %s3704_s22, 32 }
0x1a74   :  { %p2947_p5 = scmp.ne.s32.totalorder %s3704_s22, %s2946_s13  ;;  %p2950_p6 = scmp.lt.u32.totalorder %s2946_s13, %s3704_s22 }
0x1a76   :  { %p2952_p7 = pnand %p2950_p6, %p2947_p5 }
0x1a78   :  { %2955 = shalt.err (!%p2952_p7)
}
0x1a79   :  { %2381 = dma.vmem_to_hbm [thread:$0]  %s2379_s17, 32, %s3704_s22, [#allocation3]  }
0x1a7a   :  { %2956 = dma.done.wait [#allocation3], 32  }
0x1a7b   :  { %2957 = vsyncadd [#allocation3], 4294967264 }
0x1a7c   :  { %2385 = vsyncpa [#allocation3], 1 }

</bundles_post_ra>
